<compile_context>
chip_gen: v7x
topology: tpu7x:2x2x1
jax: 0.10.0
libtpu: 0.0.40
codegen_flags: <defaults>
</compile_context>

<pallas_src>
import functools

import jax
import jax.numpy as jnp
from jax import lax
from jax.experimental import pallas as pl
from jax.experimental.pallas import tpu as pltpu


def _supcon_kernel(labr_ref, labc_ref, fq_ref, fkT_ref, loss_ref,
                   m_scr, se_scr, sml_scr, sm_scr,
                   *, scale_out, tq, tk, batch):
    qi = pl.program_id(0)
    ki = pl.program_id(1)
    nk = pl.num_programs(1)

    @pl.when(ki == 0)
    def _init():
        m_scr[...] = jnp.full((tq, 1), -jnp.inf, jnp.float32)
        se_scr[...] = jnp.zeros((tq, 1), jnp.float32)
        sml_scr[...] = jnp.zeros((tq, 1), jnp.float32)
        sm_scr[...] = jnp.zeros((tq, 1), jnp.float32)

    # Plain NN contraction on the MXU: anchor operand was pre-scaled by
    # 1/temperature and the contrast operand pre-transposed in the wrapper.
    s = jnp.dot(fq_ref[...], fkT_ref[...],
                preferred_element_type=jnp.float32)          # (tq, tk)

    # Online-softmax running max.  Like the reference's detached logits_max it
    # includes the diagonal (>= 0), so padded zero-columns never raise it and
    # the shift cancels exactly in the final loss.
    m_prev = m_scr[...]
    m_new = jnp.maximum(m_prev, jnp.max(s, axis=1, keepdims=True))
    alpha = jnp.exp(m_prev - m_new)
    m_scr[...] = m_new

    e = jnp.exp(s - m_new)
    # Positive-pair candidates: equal (rounded, integerized) labels.
    # labr is (tq, 1), labc is (1, tk) lane-dense -> plain broadcast compare.
    lab_eq = labr_ref[...] == labc_ref[...]

    row0 = qi * tq
    col0 = ki * tk
    touches_diag = jnp.logical_and(row0 < col0 + tk, col0 < row0 + tq)
    touches_pad = (col0 + tk) > batch
    needs_mask = jnp.logical_or(touches_diag, touches_pad)

    @pl.when(needs_mask)
    def _masked_block():
        # Self-similarity ("eye") and padded-column exclusion via iota
        # compares — only paid on the few blocks that can need it.
        row_ids = row0 + lax.broadcasted_iota(jnp.int32, (tq, tk), 0)
        col_ids = col0 + lax.broadcasted_iota(jnp.int32, (tq, tk), 1)
        valid = jnp.logical_and(row_ids != col_ids, col_ids < batch)
        p = jnp.where(valid, e, 0.0)
        pos = jnp.where(jnp.logical_and(valid, lab_eq), 1.0, 0.0)
        se_scr[...] = alpha * se_scr[...] + jnp.sum(p, axis=1, keepdims=True)
        sml_scr[...] = sml_scr[...] + jnp.sum(pos * s, axis=1, keepdims=True)
        sm_scr[...] = sm_scr[...] + jnp.sum(pos, axis=1, keepdims=True)

    @pl.when(jnp.logical_not(needs_mask))
    def _fast_block():
        pos = jnp.where(lab_eq, 1.0, 0.0)
        se_scr[...] = alpha * se_scr[...] + jnp.sum(e, axis=1, keepdims=True)
        sml_scr[...] = sml_scr[...] + jnp.sum(pos * s, axis=1, keepdims=True)
        sm_scr[...] = sm_scr[...] + jnp.sum(pos, axis=1, keepdims=True)

    @pl.when(ki == nk - 1)
    def _finalize():
        s_m = sm_scr[...]
        log_denom = jnp.log(se_scr[...]) + m_scr[...]
        num = sml_scr[...] - s_m * log_denom + 1e-05
        den = s_m + 1e-05
        # Exact divide: O(tq) work, last k-step only.
        loss_ref[...] = (scale_out * (num / den)).astype(loss_ref.dtype)


def _round_up(x, m):
    return ((x + m - 1) // m) * m


def _pick_tiles(bp):
    """bp is a multiple of 128.  Bias tq so the parallel row axis has >= 2
    blocks whenever possible (v7x megacore) and keep tiles within v5e's
    16 MiB scoped-VMEM default even for large D."""
    tq = 256 if (bp >= 512 and bp % 256 == 0) else 128
    tk = 256 if (bp >= 256 and bp % 256 == 0) else 128
    return tq, tk


def supcon_loss(features, labels, temperature=1.0, base_temperature=1.0,
                matmul_dtype=jnp.bfloat16):
    """Pallas TPU implementation of SupConLoss.forward(features, labels).

    Default bf16 operands hit MXU peak on v5e/v6e/v7x and halve streamed HBM
    traffic (~1e-2 relative drift in the scalar loss); pass
    matmul_dtype=jnp.float32 for bit-level parity with the f32 reference.
    """
    features = jnp.asarray(features, jnp.float32)
    B, D = features.shape

    # Integerized rounded labels (torch.round(labels, decimals=1)); integer
    # equality avoids any float-compare fragility.
    labels = jnp.asarray(labels, jnp.float32).reshape(-1)
    lab_i = jnp.round(labels * 10.0).astype(jnp.int32)

    # Pad the batch up to a multiple of 128: zero features (their logits are 0
    # and are masked out of the exp/pos sums), sentinel labels that never
    # match real rounded labels.  Padded rows are dropped from the mean.
    Bp = _round_up(max(B, 1), 128)
    pad = Bp - B
    sentinel = -2147483647

    inv_t = 1.0 / float(temperature)
    f_pad = jnp.pad(features, ((0, pad), (0, 0)))
    # 1/temperature folded into the anchor operand once, fused with the cast.
    fq = (f_pad * inv_t).astype(matmul_dtype)                 # (Bp, D)
    fkT = f_pad.T.astype(matmul_dtype)                        # (D, Bp)

    lab_p = jnp.pad(lab_i, (0, pad), constant_values=sentinel)
    lab_row = lab_p.reshape(Bp, 1)
    lab_col = lab_p.reshape(1, Bp)

    tq, tk = _pick_tiles(Bp)
    nq, nk = Bp // tq, Bp // tk

    kernel = functools.partial(
        _supcon_kernel,
        scale_out=float(-(temperature / base_temperature)),
        tq=tq, tk=tk, batch=B)

    itemsize = int(jnp.dtype(matmul_dtype).itemsize)
    grid_spec = pltpu.PrefetchScalarGridSpec(
        num_scalar_prefetch=0,
        grid=(nq, nk),
        in_specs=[
            pl.BlockSpec((tq, 1), lambda qi, ki: (qi, 0)),    # anchor labels
            pl.BlockSpec((1, tk), lambda qi, ki: (0, ki)),    # contrast labels
            pl.BlockSpec((tq, D), lambda qi, ki: (qi, 0)),    # anchors (scaled)
            pl.BlockSpec((D, tk), lambda qi, ki: (0, ki)),    # contrast^T
        ],
        out_specs=pl.BlockSpec((tq, 1), lambda qi, ki: (qi, 0)),
        scratch_shapes=[pltpu.VMEM((tq, 1), jnp.float32)] * 4,  # m, se, sml, sm
    )

    per_anchor = pl.pallas_call(
        kernel,
        out_shape=jax.ShapeDtypeStruct((Bp, 1), jnp.float32),
        grid_spec=grid_spec,
        compiler_params=pltpu.CompilerParams(
            dimension_semantics=("parallel", "arbitrary")),
        cost_estimate=pl.CostEstimate(
            flops=2 * Bp * Bp * D,
            transcendentals=Bp * Bp,
            bytes_accessed=(nq + 1) * Bp * D * itemsize + 3 * Bp * 4),
    )(lab_row, lab_col, fq, fkT)

    # Mean over the real anchors only (padded rows produce finite garbage).
    return jnp.mean(per_anchor[:B])


def _supcon_loss_ref(features, labels, temperature=1.0, base_temperature=1.0):
    """Pure-JAX reference mirroring the PyTorch forward (n_views == 1)."""
    f = jnp.asarray(features, jnp.float32)
    lab = jnp.asarray(labels, jnp.float32).reshape(-1, 1)
    B = f.shape[0]
    lab_r = jnp.round(lab * 10.0) / 10.0
    mask = (lab_r == lab_r.T).astype(jnp.float32)
    logits = jnp.dot(f, f.T) / temperature
    logits = logits - jnp.max(logits, axis=1, keepdims=True)
    logits_mask = 1.0 - jnp.eye(B, dtype=jnp.float32)
    mask = mask * logits_mask
    exp_logits = jnp.exp(logits) * logits_mask
    log_prob = logits - jnp.log(jnp.sum(exp_logits, axis=1, keepdims=True))
    mean_log_prob_pos = (jnp.sum(mask * log_prob, axis=1) + 1e-05) / (
        jnp.sum(mask, axis=1) + 1e-05
    )
    loss = -(temperature / base_temperature) * mean_log_prob_pos
    return jnp.mean(loss)


if __name__ == "__main__":
    B, D = 8, 32
    key = jax.random.PRNGKey(0)
    kf, kl = jax.random.split(key)
    features = jax.random.normal(kf, (B, D), dtype=jnp.float32)
    # STS-B style continuous scores in [0, 5]; rounding to halves creates
    # some positive pairs after the decimals=1 rounding in the loss.
    labels = jnp.round(jax.random.uniform(kl, (B,), dtype=jnp.float32) * 10.0) / 2.0

    ref = jax.block_until_ready(_supcon_loss_ref(features, labels))

    # f32 operand path: algorithmic parity with the reference (the tiled
    # online-softmax only reassociates mathematically identical reductions).
    loss_f32 = jax.block_until_ready(
        supcon_loss(features, labels, temperature=1.0, base_temperature=1.0,
                    matmul_dtype=jnp.float32))
    assert jnp.allclose(loss_f32, ref, rtol=5e-5, atol=5e-5), (loss_f32, ref)

    # Default bf16 MXU path: same algorithm, quantized operands -> loose
    # tolerance (a real bug would miss by orders of magnitude more).
    loss_bf16 = jax.block_until_ready(
        supcon_loss(features, labels, temperature=1.0, base_temperature=1.0))
    assert jnp.allclose(loss_bf16, ref, rtol=1e-1, atol=1e-1), (loss_bf16, ref)

    print("KERNEL_OK")
</pallas_src>

<mosaic_0001>
module attributes {stable_mosaic.version = 11 : i64} {
  func.func @_supcon_kernel(%arg0: i32, %arg1: i32, %arg2: memref<128x1xi32, #tpu.memory_space<vmem>>, %arg3: memref<1x128xi32, #tpu.memory_space<vmem>>, %arg4: memref<128x32xf32, #tpu.memory_space<vmem>>, %arg5: memref<32x128xf32, #tpu.memory_space<vmem>>, %arg6: memref<128x1xf32, #tpu.memory_space<vmem>>, %arg7: memref<128x1xf32, #tpu.memory_space<vmem>>, %arg8: memref<128x1xf32, #tpu.memory_space<vmem>>, %arg9: memref<128x1xf32, #tpu.memory_space<vmem>>, %arg10: memref<128x1xf32, #tpu.memory_space<vmem>>) attributes {dimension_semantics = [#tpu.dimension_semantics<parallel>, #tpu.dimension_semantics<arbitrary>], iteration_bounds = array<i64: 1, 1>, scalar_prefetch = 0 : i64, scratch_operands = 4 : i64, tpu.core_type = #tpu.core_type<tc>, window_params = [{transform_indices = @transform_0, window_bounds = array<i64: 128, 1>}, {transform_indices = @transform_1, window_bounds = array<i64: 1, 128>}, {transform_indices = @transform_2, window_bounds = array<i64: 128, 32>}, {transform_indices = @transform_3, window_bounds = array<i64: 32, 128>}, {transform_indices = @transform_4, window_bounds = array<i64: 128, 1>}]} {
    %c0_i32 = arith.constant 0 : i32
    %0 = arith.cmpi eq, %arg1, %c0_i32 : i32
    %1 = arith.extui %0 : i1 to i32
    %c0_i32_0 = arith.constant 0 : i32
    %2 = arith.cmpi ne, %1, %c0_i32_0 : i32
    scf.if %2 {
      %cst_21 = arith.constant 0xFF800000 : f32
      %39 = vector.broadcast %cst_21 : f32 to vector<128x1xf32>
      %c0_22 = arith.constant 0 : index
      %c0_23 = arith.constant 0 : index
      %40 = vector.load %arg7[%c0_22, %c0_23] : memref<128x1xf32, #tpu.memory_space<vmem>>, vector<128x1xf32>
      tpu.vector_store %arg7[%c0_22, %c0_23], %39 {strides = array<i32>} : memref<128x1xf32, #tpu.memory_space<vmem>>, vector<128x1xf32>,
      %cst_24 = arith.constant 0.000000e+00 : f32
      %41 = vector.broadcast %cst_24 : f32 to vector<128x1xf32>
      %c0_25 = arith.constant 0 : index
      %c0_26 = arith.constant 0 : index
      %42 = vector.load %arg8[%c0_25, %c0_26] : memref<128x1xf32, #tpu.memory_space<vmem>>, vector<128x1xf32>
      tpu.vector_store %arg8[%c0_25, %c0_26], %41 {strides = array<i32>} : memref<128x1xf32, #tpu.memory_space<vmem>>, vector<128x1xf32>,
      %cst_27 = arith.constant 0.000000e+00 : f32
      %43 = vector.broadcast %cst_27 : f32 to vector<128x1xf32>
      %c0_28 = arith.constant 0 : index
      %c0_29 = arith.constant 0 : index
      %44 = vector.load %arg9[%c0_28, %c0_29] : memref<128x1xf32, #tpu.memory_space<vmem>>, vector<128x1xf32>
      tpu.vector_store %arg9[%c0_28, %c0_29], %43 {strides = array<i32>} : memref<128x1xf32, #tpu.memory_space<vmem>>, vector<128x1xf32>,
      %cst_30 = arith.constant 0.000000e+00 : f32
      %45 = vector.broadcast %cst_30 : f32 to vector<128x1xf32>
      %c0_31 = arith.constant 0 : index
      %c0_32 = arith.constant 0 : index
      %46 = vector.load %arg10[%c0_31, %c0_32] : memref<128x1xf32, #tpu.memory_space<vmem>>, vector<128x1xf32>
      tpu.vector_store %arg10[%c0_31, %c0_32], %45 {strides = array<i32>} : memref<128x1xf32, #tpu.memory_space<vmem>>, vector<128x1xf32>,
    } else {
    }
    %c0 = arith.constant 0 : index
    %c0_1 = arith.constant 0 : index
    %3 = vector.load %arg4[%c0, %c0_1] : memref<128x32xf32, #tpu.memory_space<vmem>>, vector<128x32xf32>
    %c0_2 = arith.constant 0 : index
    %c0_3 = arith.constant 0 : index
    %4 = vector.load %arg5[%c0_2, %c0_3] : memref<32x128xf32, #tpu.memory_space<vmem>>, vector<32x128xf32>
    %cst = arith.constant dense<0.000000e+00> : vector<128x128xf32>
    %5 = tpu.matmul %3, %4, %cst {dimension_numbers = #tpu.dot_dimension_numbers<[1], [0], [0], [1], [0, 0, 1, 1], [], []>} : vector<128x32xf32>, vector<32x128xf32>, vector<128x128xf32> -> vector<128x128xf32>
    %c0_4 = arith.constant 0 : index
    %c0_5 = arith.constant 0 : index
    %6 = vector.load %arg7[%c0_4, %c0_5] : memref<128x1xf32, #tpu.memory_space<vmem>>, vector<128x1xf32>
    %cst_6 = arith.constant dense<0xFF800000> : vector<128xf32>
    %7 = vector.multi_reduction <maximumf>, %5, %cst_6 [1] : vector<128x128xf32> to vector<128xf32>
    %8 = vector.shape_cast %7 : vector<128xf32> to vector<128x1xf32>
    %9 = arith.maximumf %6, %8 : vector<128x1xf32>
    %10 = arith.subf %6, %9 : vector<128x1xf32>
    %11 = math.exp %10 : vector<128x1xf32>
    %c0_7 = arith.constant 0 : index
    %c0_8 = arith.constant 0 : index
    %12 = vector.load %arg7[%c0_7, %c0_8] : memref<128x1xf32, #tpu.memory_space<vmem>>, vector<128x1xf32>
    tpu.vector_store %arg7[%c0_7, %c0_8], %9 {strides = array<i32>} : memref<128x1xf32, #tpu.memory_space<vmem>>, vector<128x1xf32>,
    %13 = vector.broadcast %9 : vector<128x1xf32> to vector<128x128xf32>
    %14 = arith.subf %5, %13 : vector<128x128xf32>
    %15 = math.exp %14 : vector<128x128xf32>
    %c0_9 = arith.constant 0 : index
    %c0_10 = arith.constant 0 : index
    %16 = vector.load %arg2[%c0_9, %c0_10] : memref<128x1xi32, #tpu.memory_space<vmem>>, vector<128x1xi32>
    %c0_11 = arith.constant 0 : index
    %c0_12 = arith.constant 0 : index
    %17 = vector.load %arg3[%c0_11, %c0_12] : memref<1x128xi32, #tpu.memory_space<vmem>>, vector<1x128xi32>
    %18 = vector.broadcast %16 : vector<128x1xi32> to vector<128x128xi32>
    %19 = vector.broadcast %17 : vector<1x128xi32> to vector<128x128xi32>
    %20 = arith.cmpi eq, %18, %19 : vector<128x128xi32>
    %c128_i32 = arith.constant 128 : i32
    %21 = arith.muli %arg0, %c128_i32 : i32
    %c128_i32_13 = arith.constant 128 : i32
    %22 = arith.muli %arg1, %c128_i32_13 : i32
    %c128_i32_14 = arith.constant 128 : i32
    %23 = arith.addi %22, %c128_i32_14 : i32
    %24 = arith.cmpi slt, %21, %23 : i32
    %c128_i32_15 = arith.constant 128 : i32
    %25 = arith.addi %21, %c128_i32_15 : i32
    %26 = arith.cmpi slt, %22, %25 : i32
    %27 = arith.andi %24, %26 : i1
    %c128_i32_16 = arith.constant 128 : i32
    %28 = arith.addi %22, %c128_i32_16 : i32
    %c8_i32 = arith.constant 8 : i32
    %29 = arith.cmpi sgt, %28, %c8_i32 : i32
    %30 = arith.ori %27, %29 : i1
    %31 = arith.extui %30 : i1 to i32
    %c0_i32_17 = arith.constant 0 : i32
    %32 = arith.cmpi ne, %31, %c0_i32_17 : i32
    scf.if %32 {
      %39 = tpu.iota {dimensions = array<i32: 0>} : vector<128x128xi32>
      %40 = vector.broadcast %21 : i32 to vector<128x128xi32>
      %41 = arith.addi %40, %39 : vector<128x128xi32>
      %42 = tpu.iota {dimensions = array<i32: 1>} : vector<128x128xi32>
      %43 = vector.broadcast %22 : i32 to vector<128x128xi32>
      %44 = arith.addi %43, %42 : vector<128x128xi32>
      %45 = arith.cmpi ne, %41, %44 : vector<128x128xi32>
      %c8_i32_21 = arith.constant 8 : i32
      %46 = vector.broadcast %c8_i32_21 : i32 to vector<128x128xi32>
      %47 = arith.cmpi slt, %44, %46 : vector<128x128xi32>
      %48 = arith.andi %45, %47 : vector<128x128xi1>
      %cst_22 = arith.constant 0.000000e+00 : f32
      %49 = vector.broadcast %cst_22 : f32 to vector<128x128xf32>
      %50 = arith.select %48, %15, %49 : vector<128x128xi1>, vector<128x128xf32>
      %51 = arith.andi %48, %20 : vector<128x128xi1>
      %cst_23 = arith.constant 1.000000e+00 : f32
      %cst_24 = arith.constant 0.000000e+00 : f32
      %52 = vector.broadcast %cst_23 : f32 to vector<128x128xf32>
      %53 = vector.broadcast %cst_24 : f32 to vector<128x128xf32>
      %54 = arith.select %51, %52, %53 : vector<128x128xi1>, vector<128x128xf32>
      %c0_25 = arith.constant 0 : index
      %c0_26 = arith.constant 0 : index
      %55 = vector.load %arg8[%c0_25, %c0_26] : memref<128x1xf32, #tpu.memory_space<vmem>>, vector<128x1xf32>
      %56 = arith.mulf %11, %55 : vector<128x1xf32>
      %cst_27 = arith.constant dense<0.000000e+00> : vector<128xf32>
      %57 = vector.multi_reduction <add>, %50, %cst_27 [1] : vector<128x128xf32> to vector<128xf32>
      %58 = vector.shape_cast %57 : vector<128xf32> to vector<128x1xf32>
      %59 = arith.addf %56, %58 : vector<128x1xf32>
      %c0_28 = arith.constant 0 : index
      %c0_29 = arith.constant 0 : index
      %60 = vector.load %arg8[%c0_28, %c0_29] : memref<128x1xf32, #tpu.memory_space<vmem>>, vector<128x1xf32>
      tpu.vector_store %arg8[%c0_28, %c0_29], %59 {strides = array<i32>} : memref<128x1xf32, #tpu.memory_space<vmem>>, vector<128x1xf32>,
      %c0_30 = arith.constant 0 : index
      %c0_31 = arith.constant 0 : index
      %61 = vector.load %arg9[%c0_30, %c0_31] : memref<128x1xf32, #tpu.memory_space<vmem>>, vector<128x1xf32>
      %62 = arith.mulf %54, %5 : vector<128x128xf32>
      %cst_32 = arith.constant dense<0.000000e+00> : vector<128xf32>
      %63 = vector.multi_reduction <add>, %62, %cst_32 [1] : vector<128x128xf32> to vector<128xf32>
      %64 = vector.shape_cast %63 : vector<128xf32> to vector<128x1xf32>
      %65 = arith.addf %61, %64 : vector<128x1xf32>
      %c0_33 = arith.constant 0 : index
      %c0_34 = arith.constant 0 : index
      %66 = vector.load %arg9[%c0_33, %c0_34] : memref<128x1xf32, #tpu.memory_space<vmem>>, vector<128x1xf32>
      tpu.vector_store %arg9[%c0_33, %c0_34], %65 {strides = array<i32>} : memref<128x1xf32, #tpu.memory_space<vmem>>, vector<128x1xf32>,
      %c0_35 = arith.constant 0 : index
      %c0_36 = arith.constant 0 : index
      %67 = vector.load %arg10[%c0_35, %c0_36] : memref<128x1xf32, #tpu.memory_space<vmem>>, vector<128x1xf32>
      %cst_37 = arith.constant dense<0.000000e+00> : vector<128xf32>
      %68 = vector.multi_reduction <add>, %54, %cst_37 [1] : vector<128x128xf32> to vector<128xf32>
      %69 = vector.shape_cast %68 : vector<128xf32> to vector<128x1xf32>
      %70 = arith.addf %67, %69 : vector<128x1xf32>
      %c0_38 = arith.constant 0 : index
      %c0_39 = arith.constant 0 : index
      %71 = vector.load %arg10[%c0_38, %c0_39] : memref<128x1xf32, #tpu.memory_space<vmem>>, vector<128x1xf32>
      tpu.vector_store %arg10[%c0_38, %c0_39], %70 {strides = array<i32>} : memref<128x1xf32, #tpu.memory_space<vmem>>, vector<128x1xf32>,
    } else {
    }
    %true = arith.constant true
    %33 = arith.xori %30, %true : i1
    %34 = arith.extui %33 : i1 to i32
    %c0_i32_18 = arith.constant 0 : i32
    %35 = arith.cmpi ne, %34, %c0_i32_18 : i32
    scf.if %35 {
      %cst_21 = arith.constant 1.000000e+00 : f32
      %cst_22 = arith.constant 0.000000e+00 : f32
      %39 = vector.broadcast %cst_21 : f32 to vector<128x128xf32>
      %40 = vector.broadcast %cst_22 : f32 to vector<128x128xf32>
      %41 = arith.select %20, %39, %40 : vector<128x128xi1>, vector<128x128xf32>
      %c0_23 = arith.constant 0 : index
      %c0_24 = arith.constant 0 : index
      %42 = vector.load %arg8[%c0_23, %c0_24] : memref<128x1xf32, #tpu.memory_space<vmem>>, vector<128x1xf32>
      %43 = arith.mulf %11, %42 : vector<128x1xf32>
      %cst_25 = arith.constant dense<0.000000e+00> : vector<128xf32>
      %44 = vector.multi_reduction <add>, %15, %cst_25 [1] : vector<128x128xf32> to vector<128xf32>
      %45 = vector.shape_cast %44 : vector<128xf32> to vector<128x1xf32>
      %46 = arith.addf %43, %45 : vector<128x1xf32>
      %c0_26 = arith.constant 0 : index
      %c0_27 = arith.constant 0 : index
      %47 = vector.load %arg8[%c0_26, %c0_27] : memref<128x1xf32, #tpu.memory_space<vmem>>, vector<128x1xf32>
      tpu.vector_store %arg8[%c0_26, %c0_27], %46 {strides = array<i32>} : memref<128x1xf32, #tpu.memory_space<vmem>>, vector<128x1xf32>,
      %c0_28 = arith.constant 0 : index
      %c0_29 = arith.constant 0 : index
      %48 = vector.load %arg9[%c0_28, %c0_29] : memref<128x1xf32, #tpu.memory_space<vmem>>, vector<128x1xf32>
      %49 = arith.mulf %41, %5 : vector<128x128xf32>
      %cst_30 = arith.constant dense<0.000000e+00> : vector<128xf32>
      %50 = vector.multi_reduction <add>, %49, %cst_30 [1] : vector<128x128xf32> to vector<128xf32>
      %51 = vector.shape_cast %50 : vector<128xf32> to vector<128x1xf32>
      %52 = arith.addf %48, %51 : vector<128x1xf32>
      %c0_31 = arith.constant 0 : index
      %c0_32 = arith.constant 0 : index
      %53 = vector.load %arg9[%c0_31, %c0_32] : memref<128x1xf32, #tpu.memory_space<vmem>>, vector<128x1xf32>
      tpu.vector_store %arg9[%c0_31, %c0_32], %52 {strides = array<i32>} : memref<128x1xf32, #tpu.memory_space<vmem>>, vector<128x1xf32>,
      %c0_33 = arith.constant 0 : index
      %c0_34 = arith.constant 0 : index
      %54 = vector.load %arg10[%c0_33, %c0_34] : memref<128x1xf32, #tpu.memory_space<vmem>>, vector<128x1xf32>
      %cst_35 = arith.constant dense<0.000000e+00> : vector<128xf32>
      %55 = vector.multi_reduction <add>, %41, %cst_35 [1] : vector<128x128xf32> to vector<128xf32>
      %56 = vector.shape_cast %55 : vector<128xf32> to vector<128x1xf32>
      %57 = arith.addf %54, %56 : vector<128x1xf32>
      %c0_36 = arith.constant 0 : index
      %c0_37 = arith.constant 0 : index
      %58 = vector.load %arg10[%c0_36, %c0_37] : memref<128x1xf32, #tpu.memory_space<vmem>>, vector<128x1xf32>
      tpu.vector_store %arg10[%c0_36, %c0_37], %57 {strides = array<i32>} : memref<128x1xf32, #tpu.memory_space<vmem>>, vector<128x1xf32>,
    } else {
    }
    %c0_i32_19 = arith.constant 0 : i32
    %36 = arith.cmpi eq, %arg1, %c0_i32_19 : i32
    %37 = arith.extui %36 : i1 to i32
    %c0_i32_20 = arith.constant 0 : i32
    %38 = arith.cmpi ne, %37, %c0_i32_20 : i32
    scf.if %38 {
      %c0_21 = arith.constant 0 : index
      %c0_22 = arith.constant 0 : index
      %39 = vector.load %arg10[%c0_21, %c0_22] : memref<128x1xf32, #tpu.memory_space<vmem>>, vector<128x1xf32>
      %c0_23 = arith.constant 0 : index
      %c0_24 = arith.constant 0 : index
      %40 = vector.load %arg8[%c0_23, %c0_24] : memref<128x1xf32, #tpu.memory_space<vmem>>, vector<128x1xf32>
      %41 = math.log %40 : vector<128x1xf32>
      %c0_25 = arith.constant 0 : index
      %c0_26 = arith.constant 0 : index
      %42 = vector.load %arg7[%c0_25, %c0_26] : memref<128x1xf32, #tpu.memory_space<vmem>>, vector<128x1xf32>
      %43 = arith.addf %41, %42 : vector<128x1xf32>
      %c0_27 = arith.constant 0 : index
      %c0_28 = arith.constant 0 : index
      %44 = vector.load %arg9[%c0_27, %c0_28] : memref<128x1xf32, #tpu.memory_space<vmem>>, vector<128x1xf32>
      %45 = arith.mulf %39, %43 : vector<128x1xf32>
      %46 = arith.subf %44, %45 : vector<128x1xf32>
      %cst_29 = arith.constant 9.99999974E-6 : f32
      %47 = vector.broadcast %cst_29 : f32 to vector<128x1xf32>
      %48 = arith.addf %46, %47 : vector<128x1xf32>
      %cst_30 = arith.constant 9.99999974E-6 : f32
      %49 = vector.broadcast %cst_30 : f32 to vector<128x1xf32>
      %50 = arith.addf %39, %49 : vector<128x1xf32>
      %51 = arith.divf %48, %50 : vector<128x1xf32>
      %cst_31 = arith.constant -1.000000e+00 : f32
      %52 = vector.broadcast %cst_31 : f32 to vector<128x1xf32>
      %53 = arith.mulf %52, %51 : vector<128x1xf32>
      %c0_32 = arith.constant 0 : index
      %c0_33 = arith.constant 0 : index
      %54 = vector.load %arg6[%c0_32, %c0_33] : memref<128x1xf32, #tpu.memory_space<vmem>>, vector<128x1xf32>
      tpu.vector_store %arg6[%c0_32, %c0_33], %53 {strides = array<i32>} : memref<128x1xf32, #tpu.memory_space<vmem>>, vector<128x1xf32>,
    } else {
    }
    return
  }
  func.func @transform_0(%arg0: i32, %arg1: i32) -> (i32, i32) {
    %c0_i32 = arith.constant 0 : i32
    %c0_i32_0 = arith.constant 0 : i32
    return %arg0, %c0_i32 : i32, i32
  }
  func.func @transform_1(%arg0: i32, %arg1: i32) -> (i32, i32) {
    %c0_i32 = arith.constant 0 : i32
    %c0_i32_0 = arith.constant 0 : i32
    return %c0_i32, %arg1 : i32, i32
  }
  func.func @transform_2(%arg0: i32, %arg1: i32) -> (i32, i32) {
    %c0_i32 = arith.constant 0 : i32
    %c0_i32_0 = arith.constant 0 : i32
    return %arg0, %c0_i32 : i32, i32
  }
  func.func @transform_3(%arg0: i32, %arg1: i32) -> (i32, i32) {
    %c0_i32 = arith.constant 0 : i32
    %c0_i32_0 = arith.constant 0 : i32
    return %c0_i32, %arg1 : i32, i32
  }
  func.func @transform_4(%arg0: i32, %arg1: i32) -> (i32, i32) {
    %c0_i32 = arith.constant 0 : i32
    %c0_i32_0 = arith.constant 0 : i32
    return %arg0, %c0_i32 : i32, i32
  }
}

</mosaic_0001>

<bundles_post_ra>
// kernel: tpu_custom_call.1
= control target key start
LH: loop header
LB: loop body
LE: loop exit
PB: predicated region body
PF: predicated region fallthrough
CT: control target
= control target key end

     0   :  { %vm106_vm0 = vcmask 261120   ;;  %v1798_v3 = vmov 0   ;;  %v655_v38 = vlaneseq  ;;  %v2875_v50 = vmov 0.0   ;;  %s2870_s3 = inlined_call_operand.vmem [shape: f32[32,128], index: 3, kind: input, shape index: {}]   ;;  %s2871_s2 = inlined_call_operand.vmem [shape: f32[128,32], index: 2, kind: input, shape index: {}]   ;;  %s2872_s0 = inlined_call_operand.vmem [shape: s32[128,1], index: 0, kind: input, shape index: {}]   ;;  %s2873_s1 = inlined_call_operand.vmem [shape: s32[1,128], index: 1, kind: input, shape index: {}]   ;;  %s2874_s4 = inlined_call_operand.vmem [shape: f32[128,1], index: 4, kind: output, shape index: {}]  }
   0x1   :  { %v102_v0 = vld [vmem:[%s2870_s3] sm:$0xff]  ;;  %v103_v1 = vld [vmem:[%s2870_s3 + $0x8] sm:$0xff]  ;;  %v104_v2 = vld [vmem:[%s2870_s3 + $0x10] sm:$0xff]  ;;  %1668 = vset.pattern.permute.xlu1 %v1798_v3  ;;  %1669 = vset.pattern.permute.xlu0 %v1798_v3  ;;  %v2917_v57 = vmov 0  ;;  %v1800_v63 = vmov -inf  }
   0x2   :  { %v1653_v4 = vpack.c.bf16 %v103_v1, %v102_v0  ;;  %v105_v5 = vld [vmem:[%s2870_s3 + $0x18] sm:$0xff]  ;;  %v86_v6 = vld [vmem:[%s2871_s2] sm:$0xff]  ;;  %v558_v10 = vld [vmem:[%s2872_s0 + $0x8] sm:$0xff]  ;;  %v1947_v39 = vshrl.u32 %v655_v38, 7  ;;  %v1949_v40 = vand.u32 127, %v655_v38 }
   0x3   :  { %v94_v7 = vld [vmem:[%s2871_s2 + $0x40] sm:$0xff]  ;;  %v1657_v8 = vpack.c.bf16 %v105_v5, %v104_v2  ;;  %1629 = vmatprep.mubr.msk.f32.mxu0 %vm106_vm0, %v86_v6  ;;  %v87_v11 = vld [vmem:[%s2871_s2 + $0x8] sm:$0xff]  ;;  %v88_v13 = vld [vmem:[%s2871_s2 + $0x10] sm:$0xff]  ;;  %578 = vperm.xlu0 %1669, %v558_v10  }
   0x4   :  { %1641 = vmatprep.mubr.msk.f32.mxu1 %vm106_vm0, %v94_v7  ;;  %1654 = vmatprep.subr.bf16.mxu0 %v1653_v4  ;;  %v557_v9 = vld [vmem:[%s2872_s0] sm:$0xff]  ;;  %v95_v12 = vld [vmem:[%s2871_s2 + $0x48] sm:$0xff]  ;;  %v96_v14 = vld [vmem:[%s2871_s2 + $0x50] sm:$0xff]  ;;  %v657_v41 = vadd.s32 8, %v1947_v39  ;;  %vm693_vm1 = vcmp.ne.s32.totalorder %v1947_v39, %v1949_v40  ;;  %vm709_vm2 = vcmp.lt.s32.totalorder %v1949_v40, 8  ;;  %v658_v43 = vadd.s32 16, %v1947_v39 }
   0x5   :  { %1661 = vmatprep.subr.bf16.mxu1 %v1653_v4  ;;  %1656 = vmatpush3.bf16.msra.mxu0 %v1653_v4  ;;  %v559_v15 = vld [vmem:[%s2872_s0 + $0x10] sm:$0xff]  ;;  %v560_v16 = vld [vmem:[%s2872_s0 + $0x18] sm:$0xff]  ;;  %v90_v19 = vld [vmem:[%s2871_s2 + $0x20] sm:$0xff]  ;;  %v659_v45 = vadd.s32 24, %v1947_v39  ;;  %v660_v47 = vadd.s32 32, %v1947_v39  ;;  %v661_v0 = vadd.s32 40, %v1947_v39 }
   0x6   :  { %1663 = vmatpush3.bf16.msra.mxu1 %v1653_v4  ;;  %1658 = vmatprep.subr.bf16.mxu0 %v1657_v8  ;;  %v89_v17 = vld [vmem:[%s2871_s2 + $0x18] sm:$0xff]  ;;  %v98_v20 = vld [vmem:[%s2871_s2 + $0x60] sm:$0xff]  ;;  %v562_v22 = vld [vmem:[%s2872_s0 + $0x28] sm:$0xff]  ;;  %vm694_vm3 = vcmp.ne.s32.totalorder %v657_v41, %v1949_v40  ;;  %vm695_vm8 = vcmp.ne.s32.totalorder %v658_v43, %v1949_v40 }
   0x7   :  { %1662 = vmatprep.subr.bf16.mxu1 %v1657_v8  ;;  %575 = vperm.xlu1 %1668, %v557_v9   ;;  %v97_v18 = vld [vmem:[%s2871_s2 + $0x58] sm:$0xff]  ;;  %v561_v21 = vld [vmem:[%s2872_s0 + $0x20] sm:$0xff]  ;;  %v91_v23 = vld [vmem:[%s2871_s2 + $0x28] sm:$0xff]  ;;  %vm696_vm10 = vcmp.ne.s32.totalorder %v659_v45, %v1949_v40  ;;  %vm697_vm11 = vcmp.ne.s32.totalorder %v660_v47, %v1949_v40 }
   0x8   :  { %584 = vperm.xlu0 %1669, %v560_v16   ;;  %v99_v24 = vld [vmem:[%s2871_s2 + $0x68] sm:$0xff]  ;;  %v92_v25 = vld [vmem:[%s2871_s2 + $0x30] sm:$0xff]  ;;  %v564_v28 = vld [vmem:[%s2872_s0 + $0x38] sm:$0xff] }
   0x9   :  { %1660 = vmatpush3.bf16.msra.mxu0 %v1657_v8  ;;  %v100_v26 = vld [vmem:[%s2871_s2 + $0x70] sm:$0xff]  ;;  %v93_v29 = vld [vmem:[%s2871_s2 + $0x38] sm:$0xff]  ;;  %v565_v31 = vld [vmem:[%s2872_s0 + $0x40] sm:$0xff] }
   0xa   :  { %1664 = vmatpush3.bf16.msra.mxu1 %v1657_v8  ;;  %v563_v27 = vld [vmem:[%s2872_s0 + $0x30] sm:$0xff]  ;;  %v101_v30 = vld [vmem:[%s2871_s2 + $0x78] sm:$0xff]  ;;  %v566_v32 = vld [vmem:[%s2872_s0 + $0x48] sm:$0xff] }
   0xb   :  { %581 = vperm.xlu1 %1668, %v559_v15   ;;  %v567_v33 = vld [vmem:[%s2872_s0 + $0x50] sm:$0xff]  ;;  %v568_v34 = vld [vmem:[%s2872_s0 + $0x58] sm:$0xff]  ;;  %v569_v35 = vld [vmem:[%s2872_s0 + $0x60] sm:$0xff] }
   0xc   :  { %1630 = vmatmul.mubr.msk.f32.vlgmr.msra.gmra.mrb[0].mxu0 %vm106_vm0, %v87_v11  ;;  %590 = vperm.xlu0 %1669, %v562_v22   ;;  %v570_v36 = vld [vmem:[%s2872_s0 + $0x68] sm:$0xff]  ;;  %v571_v37 = vld [vmem:[%s2872_s0 + $0x70] sm:$0xff]  ;;  %v1958_v42 = vld [vmem:[%s2873_s1] ss:$0 sm:$0xff] }
   0xd   :  { %1642 = vmatmul.mubr.msk.f32.vlgmr.msra.gmra.mrb[0].mxu1 %vm106_vm0, %v95_v12  ;;  %1632 = vmatprep.mubr.msk.f32.mxu0 %vm106_vm0, %v88_v13  ;;  %vm1964_vm4 = vmand %vm693_vm1, %vm709_vm2 }
   0xe   :  { %1644 = vmatprep.mubr.msk.f32.mxu1 %vm106_vm0, %v96_v14  ;;  %vm1973_vm6 = vmand %vm694_vm3, %vm709_vm2 }
   0xf   :  { %587 = vperm.xlu1 %1668, %v561_v21   ;;  %vm1991_vm13 = vmand %vm695_vm8, %vm709_vm2  ;;  %vm2894_vm8 = vcmask 7168  }
  0x10   :  { %1633 = vmatmul.mubr.msk.f32.gmra.mrb[2].mxu0 %vm106_vm0, %v89_v17  ;;  %596 = vperm.xlu0 %1669, %v564_v28   ;;  %vm2001_vm14 = vmand %vm696_vm10, %vm709_vm2  ;;  %70 = vst.msk [vmem:[#allocation5] sm:$0xff] %vm2894_vm8, %v2875_v50  ;;  %vm698_vm10 = vcmp.ne.s32.totalorder %v661_v0, %v1949_v40 }
  0x11   :  { %1645 = vmatmul.mubr.msk.f32.gmra.mrb[2].mxu1 %vm106_vm0, %v97_v18  ;;  %1635 = vmatprep.mubr.msk.f32.mxu0 %vm106_vm0, %v90_v19  ;;  %vm2009_vm1 = vmand %vm697_vm11, %vm709_vm2  ;;  %38 = vst.msk [vmem:[#allocation3] sm:$0xff] %vm2894_vm8, %v2875_v50 }
  0x12   :  { %1647 = vmatprep.mubr.msk.f32.mxu1 %vm106_vm0, %v98_v20  ;;  %v2918_v57 = vsel %vm2009_vm1, 4294967295, %v2917_v57  ;;  %39 = vst.msk [vmem:[#allocation3 + $0x8] sm:$0xff] %vm2894_vm8, %v2875_v50  ;;  %40 = vst.msk [vmem:[#allocation3 + $0x10] sm:$0xff] %vm2894_vm8, %v2875_v50 }
  0x13   :  { %593 = vperm.xlu1 %1668, %v563_v27   ;;  %41 = vst.msk [vmem:[#allocation3 + $0x18] sm:$0xff] %vm2894_vm8, %v2875_v50  ;;  %42 = vst.msk [vmem:[#allocation3 + $0x20] sm:$0xff] %vm2894_vm8, %v2875_v50  ;;  %v572_v27 = vld [vmem:[%s2872_s0 + $0x78] sm:$0xff] }
  0x14   :  { %1636 = vmatmul.mubr.msk.f32.gmra.mrb[4].mxu0 %vm106_vm0, %v91_v23  ;;  %602 = vperm.xlu0 %1669, %v566_v32   ;;  %43 = vst.msk [vmem:[#allocation3 + $0x28] sm:$0xff] %vm2894_vm8, %v2875_v50  ;;  %44 = vst.msk [vmem:[#allocation3 + $0x30] sm:$0xff] %vm2894_vm8, %v2875_v50 }
  0x15   :  { %1648 = vmatmul.mubr.msk.f32.gmra.mrb[4].mxu1 %vm106_vm0, %v99_v24  ;;  %1638 = vmatprep.mubr.msk.f32.mxu0 %vm106_vm0, %v92_v25  ;;  %45 = vst.msk [vmem:[#allocation3 + $0x38] sm:$0xff] %vm2894_vm8, %v2875_v50  ;;  %46 = vst.msk [vmem:[#allocation3 + $0x40] sm:$0xff] %vm2894_vm8, %v2875_v50 }
  0x16   :  { %1650 = vmatprep.mubr.msk.f32.mxu1 %vm106_vm0, %v100_v26  ;;  %47 = vst.msk [vmem:[#allocation3 + $0x48] sm:$0xff] %vm2894_vm8, %v2875_v50  ;;  %48 = vst.msk [vmem:[#allocation3 + $0x50] sm:$0xff] %vm2894_vm8, %v2875_v50 }
  0x17   :  { %599 = vperm.xlu1 %1668, %v565_v31   ;;  %49 = vst.msk [vmem:[#allocation3 + $0x58] sm:$0xff] %vm2894_vm8, %v2875_v50  ;;  %50 = vst.msk [vmem:[#allocation3 + $0x60] sm:$0xff] %vm2894_vm8, %v2875_v50  ;;  %v966_v31 = vld [vmem:[#allocation5] sm:$0xff] }
  0x18   :  { %1639 = vmatmul.mubr.msk.f32.gmra.mrb[6].mxu0 %vm106_vm0, %v93_v29  ;;  %608 = vperm.xlu0 %1669, %v568_v34   ;;  %51 = vst.msk [vmem:[#allocation3 + $0x68] sm:$0xff] %vm2894_vm8, %v2875_v50  ;;  %52 = vst.msk [vmem:[#allocation3 + $0x70] sm:$0xff] %vm2894_vm8, %v2875_v50 }
  0x19   :  { %1651 = vmatmul.mubr.msk.f32.gmra.mrb[6].mxu1 %vm106_vm0, %v101_v30  ;;  %53 = vst.msk [vmem:[#allocation3 + $0x78] sm:$0xff] %vm2894_vm8, %v2875_v50  ;;  %54 = vst.msk [vmem:[#allocation4] sm:$0xff] %vm2894_vm8, %v2875_v50 }
  0x1a   :  { %55 = vst.msk [vmem:[#allocation4 + $0x8] sm:$0xff] %vm2894_vm8, %v2875_v50  ;;  %56 = vst.msk [vmem:[#allocation4 + $0x10] sm:$0xff] %vm2894_vm8, %v2875_v50 }
  0x1b   :  { %605 = vperm.xlu1 %1668, %v567_v33   ;;  %57 = vst.msk [vmem:[#allocation4 + $0x18] sm:$0xff] %vm2894_vm8, %v2875_v50  ;;  %58 = vst.msk [vmem:[#allocation4 + $0x20] sm:$0xff] %vm2894_vm8, %v2875_v50 }
  0x1c   :  { %614 = vperm.xlu0 %1669, %v570_v36   ;;  %59 = vst.msk [vmem:[#allocation4 + $0x28] sm:$0xff] %vm2894_vm8, %v2875_v50  ;;  %60 = vst.msk [vmem:[#allocation4 + $0x30] sm:$0xff] %vm2894_vm8, %v2875_v50 }
  0x1d   :  { %61 = vst.msk [vmem:[#allocation4 + $0x38] sm:$0xff] %vm2894_vm8, %v2875_v50  ;;  %62 = vst.msk [vmem:[#allocation4 + $0x40] sm:$0xff] %vm2894_vm8, %v2875_v50 }
  0x1e   :  { %63 = vst.msk [vmem:[#allocation4 + $0x48] sm:$0xff] %vm2894_vm8, %v2875_v50  ;;  %64 = vst.msk [vmem:[#allocation4 + $0x50] sm:$0xff] %vm2894_vm8, %v2875_v50 }
  0x1f   :  { %611 = vperm.xlu1 %1668, %v569_v35   ;;  %65 = vst.msk [vmem:[#allocation4 + $0x58] sm:$0xff] %vm2894_vm8, %v2875_v50  ;;  %66 = vst.msk [vmem:[#allocation4 + $0x60] sm:$0xff] %vm2894_vm8, %v2875_v50 }
  0x20   :  { %67 = vst.msk [vmem:[#allocation4 + $0x68] sm:$0xff] %vm2894_vm8, %v2875_v50  ;;  %68 = vst.msk [vmem:[#allocation4 + $0x70] sm:$0xff] %vm2894_vm8, %v2875_v50 }
  0x21   :  { %69 = vst.msk [vmem:[#allocation4 + $0x78] sm:$0xff] %vm2894_vm8, %v2875_v50  ;;  %71 = vst.msk [vmem:[#allocation5 + $0x8] sm:$0xff] %vm2894_vm8, %v2875_v50 }
  0x22   :  { %72 = vst.msk [vmem:[#allocation5 + $0x10] sm:$0xff] %vm2894_vm8, %v2875_v50  ;;  %73 = vst.msk [vmem:[#allocation5 + $0x18] sm:$0xff] %vm2894_vm8, %v2875_v50 }
  0x23   :  { %617 = vperm.xlu1 %1668, %v571_v37   ;;  %74 = vst.msk [vmem:[#allocation5 + $0x20] sm:$0xff] %vm2894_vm8, %v2875_v50  ;;  %75 = vst.msk [vmem:[#allocation5 + $0x28] sm:$0xff] %vm2894_vm8, %v2875_v50 }
  0x24   :  { %76 = vst.msk [vmem:[#allocation5 + $0x30] sm:$0xff] %vm2894_vm8, %v2875_v50  ;;  %77 = vst.msk [vmem:[#allocation5 + $0x38] sm:$0xff] %vm2894_vm8, %v2875_v50 }
  0x25   :  { %78 = vst.msk [vmem:[#allocation5 + $0x40] sm:$0xff] %vm2894_vm8, %v2875_v50  ;;  %79 = vst.msk [vmem:[#allocation5 + $0x48] sm:$0xff] %vm2894_vm8, %v2875_v50 }
  0x26   :  { %80 = vst.msk [vmem:[#allocation5 + $0x50] sm:$0xff] %vm2894_vm8, %v2875_v50  ;;  %81 = vst.msk [vmem:[#allocation5 + $0x58] sm:$0xff] %vm2894_vm8, %v2875_v50 }
  0x27   :  { %82 = vst.msk [vmem:[#allocation5 + $0x60] sm:$0xff] %vm2894_vm8, %v2875_v50  ;;  %83 = vst.msk [vmem:[#allocation5 + $0x68] sm:$0xff] %vm2894_vm8, %v2875_v50 }
  0x28   :  { %84 = vst.msk [vmem:[#allocation5 + $0x70] sm:$0xff] %vm2894_vm8, %v2875_v50  ;;  %85 = vst.msk [vmem:[#allocation5 + $0x78] sm:$0xff] %vm2894_vm8, %v2875_v50  ;;  %v967_v33 = vld [vmem:[#allocation5 + $0x8] sm:$0xff] }
  0x29   :  { %23 = vst.msk [vmem:[#allocation2 + $0x8] sm:$0xff] %vm2894_vm8, %v1800_v63  ;;  %22 = vst.msk [vmem:[#allocation2] sm:$0xff] %vm2894_vm8, %v1800_v63  ;;  %v968_v37 = vld [vmem:[#allocation5 + $0x10] sm:$0xff]  ;;  %v969_v38 = vld [vmem:[#allocation5 + $0x18] sm:$0xff] }
  0x2a   :  { %24 = vst.msk [vmem:[#allocation2 + $0x10] sm:$0xff] %vm2894_vm8, %v1800_v63  ;;  %25 = vst.msk [vmem:[#allocation2 + $0x18] sm:$0xff] %vm2894_vm8, %v1800_v63 }
  0x2b   :  { %26 = vst.msk [vmem:[#allocation2 + $0x20] sm:$0xff] %vm2894_vm8, %v1800_v63  ;;  %27 = vst.msk [vmem:[#allocation2 + $0x28] sm:$0xff] %vm2894_vm8, %v1800_v63 }
  0x2c   :  { %28 = vst.msk [vmem:[#allocation2 + $0x30] sm:$0xff] %vm2894_vm8, %v1800_v63  ;;  %29 = vst.msk [vmem:[#allocation2 + $0x38] sm:$0xff] %vm2894_vm8, %v1800_v63 }
  0x2d   :  { %30 = vst.msk [vmem:[#allocation2 + $0x40] sm:$0xff] %vm2894_vm8, %v1800_v63  ;;  %31 = vst.msk [vmem:[#allocation2 + $0x48] sm:$0xff] %vm2894_vm8, %v1800_v63 }
  0x2e   :  { %32 = vst.msk [vmem:[#allocation2 + $0x50] sm:$0xff] %vm2894_vm8, %v1800_v63  ;;  %33 = vst.msk [vmem:[#allocation2 + $0x58] sm:$0xff] %vm2894_vm8, %v1800_v63 }
  0x2f   :  { %34 = vst.msk [vmem:[#allocation2 + $0x60] sm:$0xff] %vm2894_vm8, %v1800_v63  ;;  %35 = vst.msk [vmem:[#allocation2 + $0x68] sm:$0xff] %vm2894_vm8, %v1800_v63 }
  0x30   :  { %36 = vst.msk [vmem:[#allocation2 + $0x70] sm:$0xff] %vm2894_vm8, %v1800_v63  ;;  %37 = vst.msk [vmem:[#allocation2 + $0x78] sm:$0xff] %vm2894_vm8, %v1800_v63 }
  0x82   :  { %v579_v49 = vpop.permute.xlu0 %578 }
  0x83   :  { %vm627_vm9 = vcmp.eq.s32.totalorder %v579_v49, %v1958_v42 }
  0x84   :  { %vm743_vm12 = vmand %vm1973_vm6, %vm627_vm9 }
  0x85   :  { %v1996_v53 = vsel %vm743_vm12, 1.0, %v2875_v50  ;;  %vm2165_vm12 = vmand %vm698_vm10, %vm709_vm2 }
  0x86   :  { %v576_v46 = vpop.permute.xlu1 %575  ;;  %984 = vadd.xlane.f32.xlu1 %v1996_v53 }
  0x87   :  { %vm626_vm5 = vcmp.eq.s32.totalorder %v576_v46, %v1958_v42  ;;  %v585_v55 = vpop.permute.xlu0 %584  ;;  %v970_v46 = vld [vmem:[#allocation5 + $0x20] sm:$0xff] }
  0x88   :  { %vm742_vm7 = vmand %vm1964_vm4, %vm626_vm5  ;;  %vm629_vm0 = vcmp.eq.s32.totalorder %v585_v55, %v1958_v42  ;;  %v2242_v55 = vld [vmem:[#allocation2 + $0x8] sm:$0xff] }
  0x89   :  { %v1982_v51 = vsel %vm742_vm7, 1.0, %v2875_v50  ;;  %vm745_vm5 = vmand %vm2001_vm14, %vm629_vm0 }
  0x8a   :  { %982 = vadd.xlane.f32.xlu0 %v1982_v51  ;;  %v582_v54 = vpop.permute.xlu1 %581  ;;  %v2022_v60 = vsel %vm745_vm5, 1.0, %v2875_v50 }
  0x8b   :  { %vm628_vm15 = vcmp.eq.s32.totalorder %v582_v54, %v1958_v42  ;;  %988 = vadd.xlane.f32.xlu1 %v2022_v60  ;;  %v591_v1 = vpop.permute.xlu0 %590 }
  0x8c   :  { %vm744_vm3 = vmand %vm1991_vm13, %vm628_vm15  ;;  %vm631_vm11 = vcmp.eq.s32.totalorder %v591_v1, %v1958_v42 }
  0x8d   :  { %v2016_v58 = vsel %vm744_vm3, 1.0, %v2875_v50  ;;  %vm747_vm15 = vmand %vm2165_vm12, %vm631_vm11 }
  0x8e   :  { %v588_v59 = vpop.permute.xlu1 %587  ;;  %986 = vadd.xlane.f32.xlu0 %v2016_v58  ;;  %v2186_v13 = vsel %vm747_vm15, 1.0, %v2875_v50 }
  0x8f   :  { %vm630_vm7 = vcmp.eq.s32.totalorder %v588_v59, %v1958_v42  ;;  %v2218_v22 = vpop.permute.xlu0 %596  ;;  %v2244_v59 = vld [vmem:[#allocation2 + $0x48] sm:$0xff] }
  0x90   :  { %vm2028_vm9 = vmand %vm2009_vm1, %vm630_vm7 }
  0x91   :  { %v2131_v62 = vsel %vm2028_vm9, 1.0, %v2875_v50 }
  0x92   :  { %990 = vadd.xlane.f32.xlu0 %v2131_v62  ;;  %v2216_v21 = vpop.permute.xlu1 %593 }
  0x93   :  { %v2222_v24 = vpop.permute.xlu0 %602  ;;  %vm632_vm10 = vcmp.eq.s32.totalorder %v2216_v21, %v1958_v42 }
  0x96   :  { %v2220_v23 = vpop.permute.xlu1 %599 }
  0x97   :  { %v2226_v26 = vpop.permute.xlu0 %608 }
  0x9a   :  { %v2224_v25 = vpop.permute.xlu1 %605 }
  0x9b   :  { %v2233_v29 = vpop.permute.xlu0 %614 }
  0x9e   :  { %v2231_v28 = vpop.permute.xlu1 %611 }
  0xa2   :  { %v2235_v30 = vpop.permute.xlu1 %617 }
  0xdf   :  { %v2152_v2 = vpop.f32.mrb[0].mxu0 }
  0xe0   :  { %v2154_v3 = vpop.f32.mrb[0].mxu1  ;;  %v2156_v4 = vpop.f32.mrb[1].mxu0  ;;  %318 = vmax.xlane.f32.xlu0 %v2152_v2 }
  0xe1   :  { %v2158_v5 = vpop.f32.mrb[1].mxu1  ;;  %334 = vmax.xlane.f32.xlu1 %v2154_v3 }
  0xe3   :  { %v2169_v7 = vpop.f32.mrb[2].mxu0 }
  0xe4   :  { %v2171_v8 = vpop.f32.mrb[2].mxu1  ;;  %v2173_v9 = vpop.f32.mrb[3].mxu0  ;;  %316 = vmax.xlane.f32.xlu0 %v2156_v4 }
  0xe5   :  { %v2175_v10 = vpop.f32.mrb[3].mxu1  ;;  %322 = vmax.xlane.f32.xlu1 %v2169_v7 }
  0xe7   :  { %v2181_v11 = vpop.f32.mrb[4].mxu0 }
  0xe8   :  { %v2183_v12 = vpop.f32.mrb[4].mxu1  ;;  %v2188_v14 = vpop.f32.mrb[5].mxu0  ;;  %332 = vmax.xlane.f32.xlu0 %v2158_v5  ;;  %v2196_v16 = vmul.f32 %v2181_v11, %v2186_v13 }
  0xe9   :  { %v2190_v15 = vpop.f32.mrb[5].mxu1  ;;  %338 = vmax.xlane.f32.xlu1 %v2171_v8 }
  0xeb   :  { %v2198_v17 = vpop.f32.mrb[6].mxu0 }
  0xec   :  { %v2200_v18 = vpop.f32.mrb[6].mxu1  ;;  %v2202_v19 = vpop.f32.mrb[7].mxu0  ;;  %336 = vmax.xlane.f32.xlu0 %v2175_v10 }
  0xed   :  { %v2204_v20 = vpop.f32.mrb[7].mxu1  ;;  %320 = vmax.xlane.f32.xlu1 %v2173_v9 }
  0xf0   :  { %324 = vmax.xlane.f32.xlu0 %v2188_v14 }
  0xf1   :  { %326 = vmax.xlane.f32.xlu1 %v2181_v11 }
  0xf4   :  { %340 = vmax.xlane.f32.xlu0 %v2190_v15 }
  0xf5   :  { %342 = vmax.xlane.f32.xlu1 %v2183_v12 }
  0xf8   :  { %328 = vmax.xlane.f32.xlu0 %v2202_v19 }
  0xf9   :  { %330 = vmax.xlane.f32.xlu1 %v2198_v17 }
  0xfc   :  { %344 = vmax.xlane.f32.xlu0 %v2204_v20 }
  0xfd   :  { %346 = vmax.xlane.f32.xlu1 %v2200_v18 }
 0x112   :  { %620 = vperm.xlu0 %1669, %v572_v27   ;;  %v2252_v27 = vld [vmem:[#allocation2] sm:$0xff] }
 0x113   :  { %v985_v35 = vpop.xlane.xlu1 %984 }
 0x114   :  { %v1015_v36 = vadd.f32 %v985_v35, %v967_v33  ;;  %v2349_v33 = vld [vmem:[#allocation2 + $0x38] sm:$0xff] }
 0x115   :  { %2940 = vst [vmem:[#allocation23_spill] sm:$0xff] %v2349_v33 }
 0x116   :  { %1031 = vst.msk [vmem:[#allocation5 + $0x8] sm:$0xff] %vm2894_vm8, %v1015_v36 }
 0x117   :  { %v983_v32 = vpop.xlane.xlu0 %982 }
 0x118   :  { %v1014_v34 = vadd.f32 %v983_v32, %v966_v31  ;;  %v989_v45 = vpop.xlane.xlu1 %988  ;;  %v2254_v31 = vld [vmem:[#allocation2 + $0x18] sm:$0xff]  ;;  %v2313_v32 = vld [vmem:[#allocation2 + $0x20] sm:$0xff] }
 0x119   :  { %v1017_v47 = vadd.f32 %v989_v45, %v969_v38  ;;  %2923 = vst [vmem:[#allocation6_spill] sm:$0xff] %v2254_v31  ;;  %v2272_v38 = vld [vmem:[#allocation2 + $0x40] sm:$0xff]  ;;  %2933 = vst [vmem:[#allocation16_spill] sm:$0xff] %v2313_v32 }
 0x11a   :  { %1030 = vst.msk [vmem:[#allocation5] sm:$0xff] %vm2894_vm8, %v1014_v34 }
 0x11b   :  { %v987_v41 = vpop.xlane.xlu0 %986  ;;  %1033 = vst.msk [vmem:[#allocation5 + $0x18] sm:$0xff] %vm2894_vm8, %v1017_v47 }
 0x11c   :  { %v1016_v43 = vadd.f32 %v987_v41, %v968_v37  ;;  %v2274_v41 = vld [vmem:[#allocation2 + $0x58] sm:$0xff] }
 0x11d   :  { %2925 = vst [vmem:[#allocation8_spill] sm:$0xff] %v2274_v41 }
 0x11e   :  { %1032 = vst.msk [vmem:[#allocation5 + $0x10] sm:$0xff] %vm2894_vm8, %v1016_v43  ;;  %v2311_v43 = vld [vmem:[#allocation2 + $0x28] sm:$0xff] }
 0x11f   :  { %v991_v49 = vpop.xlane.xlu0 %990  ;;  %2932 = vst [vmem:[#allocation15_spill] sm:$0xff] %v2311_v43 }
 0x120   :  { %v1018_v54 = vadd.f32 %v991_v49, %v970_v46 }
 0x122   :  { %1034 = vst.msk [vmem:[#allocation5 + $0x20] sm:$0xff] %vm2894_vm8, %v1018_v54 }
 0x16d   :  { %v319_v61 = vpop.xlane.xlu0 %318 }
 0x16e   :  { %v335_v63 = vpop.xlane.xlu1 %334  ;;  %v2247_v0 = vmax.f32 %v2242_v55, %v319_v61  ;;  %v2291_v61 = vld [vmem:[#allocation2 + $0x50] sm:$0xff] }
 0x16f   :  { %v2250_v1 = vmax.f32 %v2244_v59, %v335_v63  ;;  %2928 = vst [vmem:[#allocation11_spill] sm:$0xff] %v2291_v61  ;;  %v2293_v63 = vld [vmem:[#allocation2 + $0x10] sm:$0xff] }
 0x170   :  { %414 = vst.msk [vmem:[#allocation2 + $0x8] sm:$0xff] %vm2894_vm8, %v2247_v0  ;;  %436 = vperm.xlu1 %1668, %v2247_v0   ;;  %2929 = vst [vmem:[#allocation12_spill] sm:$0xff] %v2293_v63 }
 0x171   :  { %422 = vst.msk [vmem:[#allocation2 + $0x48] sm:$0xff] %vm2894_vm8, %v2250_v1  ;;  %476 = vperm.xlu0 %1669, %v2250_v1   ;;  %v317_v34 = vpop.xlane.xlu0 %316 }
 0x172   :  { %v323_v35 = vpop.xlane.xlu1 %322  ;;  %v2267_v36 = vmax.f32 %v2252_v27, %v317_v34 }
 0x173   :  { %v2270_v37 = vmax.f32 %v2254_v31, %v323_v35  ;;  %v2330_v35 = vld [vmem:[#allocation2 + $0x68] sm:$0xff]  ;;  %v2371_v31 = vld [vmem:[#allocation2 + $0x70] sm:$0xff] }
 0x174   :  { %413 = vst.msk [vmem:[#allocation2] sm:$0xff] %vm2894_vm8, %v2267_v36  ;;  %2936 = vst [vmem:[#allocation19_spill] sm:$0xff] %v2330_v35 }
 0x175   :  { %2924 = vst [vmem:[#allocation7_spill] sm:$0xff] %v2270_v37  ;;  %416 = vst.msk [vmem:[#allocation2 + $0x18] sm:$0xff] %vm2894_vm8, %v2270_v37  ;;  %431 = vperm.xlu0 %1669, %v2267_v36   ;;  %v333_v46 = vpop.xlane.xlu0 %332 }
 0x176   :  { %v339_v47 = vpop.xlane.xlu1 %338  ;;  %v2286_v49 = vmax.f32 %v2272_v38, %v333_v46  ;;  %2945 = vst [vmem:[#allocation28_spill] sm:$0xff] %v2371_v31 }
 0x177   :  { %v2289_v54 = vmax.f32 %v2274_v41, %v339_v47 }
 0x178   :  { %2926 = vst [vmem:[#allocation9_spill] sm:$0xff] %v2286_v49  ;;  %421 = vst.msk [vmem:[#allocation2 + $0x40] sm:$0xff] %vm2894_vm8, %v2286_v49  ;;  %471 = vperm.xlu1 %1668, %v2286_v49  }
 0x179   :  { %2927 = vst [vmem:[#allocation10_spill] sm:$0xff] %v2289_v54  ;;  %424 = vst.msk [vmem:[#allocation2 + $0x58] sm:$0xff] %vm2894_vm8, %v2289_v54  ;;  %486 = vperm.xlu0 %1669, %v2289_v54   ;;  %v337_v46 = vpop.xlane.xlu0 %336 }
 0x17a   :  { %v321_v47 = vpop.xlane.xlu1 %320  ;;  %v2306_v45 = vmax.f32 %v2291_v61, %v337_v46  ;;  %v2332_v61 = vld [vmem:[#allocation2 + $0x60] sm:$0xff] }
 0x17b   :  { %v2309_v34 = vmax.f32 %v2293_v63, %v321_v47  ;;  %2937 = vst [vmem:[#allocation20_spill] sm:$0xff] %v2332_v61 }
 0x17c   :  { %2930 = vst [vmem:[#allocation13_spill] sm:$0xff] %v2306_v45  ;;  %423 = vst.msk [vmem:[#allocation2 + $0x50] sm:$0xff] %vm2894_vm8, %v2306_v45  ;;  %446 = vperm.xlu1 %1668, %v2270_v37  }
 0x17d   :  { %2931 = vst [vmem:[#allocation14_spill] sm:$0xff] %v2309_v34  ;;  %415 = vst.msk [vmem:[#allocation2 + $0x10] sm:$0xff] %vm2894_vm8, %v2309_v34  ;;  %v325_v47 = vpop.xlane.xlu0 %324 }
 0x17e   :  { %v327_v46 = vpop.xlane.xlu1 %326  ;;  %v2328_v54 = vmax.f32 %v2313_v32, %v325_v47 }
 0x17f   :  { %v2325_v50 = vmax.f32 %v2311_v43, %v327_v46  ;;  %v2351_v43 = vld [vmem:[#allocation2 + $0x30] sm:$0xff] }
 0x180   :  { %2935 = vst [vmem:[#allocation18_spill] sm:$0xff] %v2328_v54  ;;  %441 = vperm.xlu1 %1668, %v2309_v34   ;;  %417 = vst.msk [vmem:[#allocation2 + $0x20] sm:$0xff] %vm2894_vm8, %v2328_v54 }
 0x181   :  { %2934 = vst [vmem:[#allocation17_spill] sm:$0xff] %v2325_v50  ;;  %418 = vst.msk [vmem:[#allocation2 + $0x28] sm:$0xff] %vm2894_vm8, %v2325_v50  ;;  %v341_v47 = vpop.xlane.xlu0 %340 }
 0x182   :  { %v343_v46 = vpop.xlane.xlu1 %342  ;;  %v2347_v37 = vmax.f32 %v2332_v61, %v341_v47  ;;  %2941 = vst [vmem:[#allocation24_spill] sm:$0xff] %v2351_v43  ;;  %v671_v61 = vadd.s32 120, %v1947_v39 }
 0x183   :  { %v2344_v41 = vmax.f32 %v2330_v35, %v343_v46  ;;  %v2369_v35 = vld [vmem:[#allocation2 + $0x78] sm:$0xff]  ;;  %v2950_v46 = vmov 0.0  }
 0x184   :  { %2939 = vst [vmem:[#allocation22_spill] sm:$0xff] %v2347_v37  ;;  %481 = vperm.xlu1 %1668, %v2306_v45   ;;  %425 = vst.msk [vmem:[#allocation2 + $0x60] sm:$0xff] %vm2894_vm8, %v2347_v37  ;;  %vm708_vm0 = vcmp.ne.s32.totalorder %v671_v61, %v1949_v40 }
 0x185   :  { %2938 = vst [vmem:[#allocation21_spill] sm:$0xff] %v2344_v41  ;;  %426 = vst.msk [vmem:[#allocation2 + $0x68] sm:$0xff] %vm2894_vm8, %v2344_v41  ;;  %496 = vperm.xlu0 %1669, %v2344_v41   ;;  %v329_v63 = vpop.xlane.xlu0 %328 }
 0x186   :  { %v331_v47 = vpop.xlane.xlu1 %330  ;;  %v2367_v34 = vmax.f32 %v2351_v43, %v329_v63  ;;  %2944 = vst [vmem:[#allocation27_spill] sm:$0xff] %v2369_v35  ;;  %vm2403_vm3 = vmand %vm708_vm0, %vm709_vm2 }
 0x187   :  { %v2364_v32 = vmax.f32 %v2349_v33, %v331_v47 }
 0x188   :  { %2943 = vst [vmem:[#allocation26_spill] sm:$0xff] %v2367_v34  ;;  %456 = vperm.xlu1 %1668, %v2325_v50   ;;  %419 = vst.msk [vmem:[#allocation2 + $0x30] sm:$0xff] %vm2894_vm8, %v2367_v34 }
 0x189   :  { %2942 = vst [vmem:[#allocation25_spill] sm:$0xff] %v2364_v32  ;;  %420 = vst.msk [vmem:[#allocation2 + $0x38] sm:$0xff] %vm2894_vm8, %v2364_v32  ;;  %v345_v47 = vpop.xlane.xlu0 %344 }
 0x18a   :  { %v347_v63 = vpop.xlane.xlu1 %346  ;;  %v2387_v41 = vmax.f32 %v2371_v31, %v345_v47  ;;  %v662_v31 = vadd.s32 48, %v1947_v39 }
 0x18b   :  { %v2384_v45 = vmax.f32 %v2369_v35, %v347_v63  ;;  %v2948_v63 = vmov 0  ;;  %v666_v35 = vadd.s32 80, %v1947_v39 }
 0x18c   :  { %2947 = vst [vmem:[#allocation30_spill] sm:$0xff] %v2387_v41  ;;  %451 = vperm.xlu1 %1668, %v2328_v54   ;;  %427 = vst.msk [vmem:[#allocation2 + $0x70] sm:$0xff] %vm2894_vm8, %v2387_v41  ;;  %v2949_v63 = vsel %vm2403_vm3, 4294967295, %v2948_v63  ;;  %vm699_vm9 = vcmp.ne.s32.totalorder %v662_v31, %v1949_v40  ;;  %v668_v31 = vadd.s32 96, %v1947_v39 }
 0x18d   :  { %2946 = vst [vmem:[#allocation29_spill] sm:$0xff] %v2384_v45  ;;  %428 = vst.msk [vmem:[#allocation2 + $0x78] sm:$0xff] %vm2894_vm8, %v2384_v45  ;;  %506 = vperm.xlu0 %1669, %v2384_v45   ;;  %v2951_v45 = vmov 0  ;;  %vm636_vm8 = vcmp.eq.s32.totalorder %v2224_v25, %v1958_v42  ;;  %v2957_v25 = vmov 0 }
 0x18e   :  { %vm2427_vm11 = vmand %vm699_vm9, %vm709_vm2  ;;  %vm703_vm9 = vcmp.ne.s32.totalorder %v666_v35, %v1949_v40  ;;  %v670_v35 = vadd.s32 112, %v1947_v39 }
 0x18f   :  { %v2952_v45 = vsel %vm2427_vm11, 4294967295, %v2951_v45  ;;  %vm748_vm0 = vmand %vm2427_vm11, %vm632_vm10  ;;  %vm705_vm11 = vcmp.ne.s32.totalorder %v668_v31, %v1949_v40 }
 0x190   :  { %491 = vperm.xlu1 %1668, %v2347_v37   ;;  %v2961_v37 = vmov 0 }
 0x191   :  { %v621_v47 = vpop.permute.xlu0 %620 }
 0x192   :  { %vm641_vm5 = vcmp.eq.s32.totalorder %v621_v47, %v1958_v42  ;;  %v664_v47 = vadd.s32 64, %v1947_v39 }
 0x193   :  { %vm757_vm7 = vmand %vm2403_vm3, %vm641_vm5  ;;  %vm634_vm5 = vcmp.eq.s32.totalorder %v2220_v23, %v1958_v42  ;;  %vm707_vm3 = vcmp.ne.s32.totalorder %v670_v35, %v1949_v40  ;;  %v663_v35 = vadd.s32 56, %v1947_v39 }
 0x194   :  { %466 = vperm.xlu1 %1668, %v2364_v32   ;;  %v2412_v33 = vsel %vm757_vm7, 1.0, %v2950_v46  ;;  %vm701_vm15 = vcmp.ne.s32.totalorder %v664_v47, %v1949_v40  ;;  %v2446_v47 = vsel %vm748_vm0, 1.0, %v2950_v46  ;;  %vm2486_vm1 = vmand %vm707_vm3, %vm709_vm2  ;;  %vm633_vm3 = vcmp.eq.s32.totalorder %v2218_v22, %v1958_v42 }
 0x195   :  { %v2416_v61 = vmul.f32 %v2200_v18, %v2412_v33  ;;  %vm2439_vm7 = vmand %vm701_vm15, %vm709_vm2  ;;  %v886_v32 = vmul.f32 %v1982_v51, %v2156_v4  ;;  %v888_v51 = vmul.f32 %v2016_v58, %v2173_v9  ;;  %v890_v58 = vmul.f32 %v2131_v62, %v2188_v14 }
 0x196   :  { %vm750_vm10 = vmand %vm2439_vm7, %vm634_vm5  ;;  %vm638_vm5 = vcmp.eq.s32.totalorder %v2231_v28, %v1958_v42  ;;  %v2959_v28 = vmov 0 }
 0x197   :  { %vm2455_vm15 = vmand %vm703_vm9, %vm709_vm2  ;;  %v2960_v28 = vsel %vm2486_vm1, 4294967295, %v2959_v28 }
 0x198   :  { %461 = vperm.xlu1 %1668, %v2367_v34   ;;  %vm752_vm0 = vmand %vm2455_vm15, %vm636_vm8  ;;  %vm640_vm8 = vcmp.eq.s32.totalorder %v2235_v30, %v1958_v42  ;;  %v665_v30 = vadd.s32 72, %v1947_v39 }
 0x199   :  { %vm2471_vm9 = vmand %vm705_vm11, %vm709_vm2  ;;  %v2477_v31 = vsel %vm752_vm0, 1.0, %v2950_v46  ;;  %vm700_vm0 = vcmp.ne.s32.totalorder %v663_v35, %v1949_v40  ;;  %v667_v35 = vadd.s32 88, %v1947_v39 }
 0x19a   :  { %v2958_v25 = vsel %vm2471_vm9, 4294967295, %v2957_v25  ;;  %vm756_vm11 = vmand %vm2486_vm1, %vm640_vm8 }
 0x19b   :  { %v2498_v43 = vsel %vm756_vm11, 1.0, %v2950_v46  ;;  %vm635_vm11 = vcmp.eq.s32.totalorder %v2222_v24, %v1958_v42  ;;  %vm704_vm1 = vcmp.ne.s32.totalorder %v667_v35, %v1949_v40 }
 0x19c   :  { %501 = vperm.xlu1 %1668, %v2387_v41   ;;  %v2462_v41 = vsel %vm750_vm10, 1.0, %v2950_v46  ;;  %vm754_vm10 = vmand %vm2471_vm9, %vm638_vm5  ;;  %vm639_vm9 = vcmp.eq.s32.totalorder %v2233_v29, %v1958_v42 }
 0x19d   :  { %v2491_v34 = vsel %vm754_vm10, 1.0, %v2950_v46  ;;  %vm2509_vm5 = vmand %vm700_vm0, %vm709_vm2  ;;  %vm702_vm10 = vcmp.ne.s32.totalorder %v665_v30, %v1949_v40 }
 0x19e   :  { %v2962_v37 = vsel %vm2509_vm5, 4294967295, %v2961_v37  ;;  %vm749_vm8 = vmand %vm2509_vm5, %vm633_vm3  ;;  %vm637_vm5 = vcmp.eq.s32.totalorder %v2226_v26, %v1958_v42  ;;  %v889_v42 = vmul.f32 %v2169_v7, %v2022_v60 }
 0x19f   :  { %vm2524_vm0 = vmand %vm702_vm10, %vm709_vm2 }
 0x1a0   :  { %vm751_vm3 = vmand %vm2524_vm0, %vm635_vm11 }
 0x1a1   :  { %vm2542_vm10 = vmand %vm704_vm1, %vm709_vm2 }
 0x1a2   :  { %vm753_vm11 = vmand %vm2542_vm10, %vm637_vm5 }
 0x1a3   :  { %v2562_v26 = vsel %vm753_vm11, 1.0, %v2950_v46 }
 0x1ac   :  { %994 = vadd.xlane.f32.xlu0 %v2446_v47 }
 0x1b0   :  { %998 = vadd.xlane.f32.xlu0 %v2462_v41 }
 0x1b4   :  { %1002 = vadd.xlane.f32.xlu0 %v2477_v31 }
 0x1b8   :  { %1006 = vadd.xlane.f32.xlu0 %v2491_v34 }
 0x1bc   :  { %1010 = vadd.xlane.f32.xlu0 %v2498_v43 }
 0x1c0   :  { %902 = vadd.xlane.f32.xlu0 %v886_v32  ;;  %992 = vadd.xlane.f32.xlu1 %v2186_v13  ;;  %v669_v32 = vadd.s32 104, %v1947_v39  ;;  %v2531_v13 = vsel %vm749_vm8, 1.0, %v2950_v46  ;;  %v2548_v39 = vsel %vm751_vm3, 1.0, %v2950_v46 }
 0x1c2   :  { %vm706_vm8 = vcmp.ne.s32.totalorder %v669_v32, %v1949_v40  ;;  %v887_v40 = vmul.f32 %v2152_v2, %v1996_v53 }
 0x1c3   :  { %vm2557_vm1 = vmand %vm706_vm8, %vm709_vm2  ;;  %vm2969_vm2 = vnez %v2918_v57 }
 0x1c4   :  { %906 = vadd.xlane.f32.xlu0 %v888_v51  ;;  %996 = vadd.xlane.f32.xlu1 %v2531_v13  ;;  %vm755_vm3 = vmand %vm2557_vm1, %vm639_vm9 }
 0x1c5   :  { %v2568_v30 = vsel %vm755_vm3, 1.0, %v2950_v46 }
 0x1c8   :  { %910 = vadd.xlane.f32.xlu0 %v890_v58  ;;  %1000 = vadd.xlane.f32.xlu1 %v2548_v39 }
 0x1cc   :  { %1004 = vadd.xlane.f32.xlu1 %v2562_v26 }
 0x1d0   :  { %1008 = vadd.xlane.f32.xlu1 %v2568_v30 }
 0x1d4   :  { %1012 = vadd.xlane.f32.xlu1 %v2412_v33 }
 0x1d8   :  { %904 = vadd.xlane.f32.xlu1 %v887_v40 }
 0x1dc   :  { %908 = vadd.xlane.f32.xlu1 %v889_v42 }
 0x1e0   :  { %912 = vadd.xlane.f32.xlu1 %v2196_v16 }
 0x1ef   :  { %v437_v35 = vpop.permute.xlu1 %436 }
 0x1f0   :  { %v477_v29 = vpop.permute.xlu0 %476  ;;  %v510_v46 = vsub.f32 %v2152_v2, %v437_v35 }
 0x1f1   :  { %v518_v51 = vsub.f32 %v2154_v3, %v477_v29 }
 0x1f2   :  { %v527_v58 = vmul.f32 1.442695, %v510_v46 }
 0x1f3   :  { %v543_v32 = vmul.f32 1.442695, %v518_v51 }
 0x1f4   :  { %v432_v54 = vpop.permute.xlu0 %431 }
 0x1f5   :  { %1670 = vpow2.f32 %v543_v32  ;;  %v509_v33 = vsub.f32 %v2156_v4, %v432_v54 }
 0x1f6   :  { %1672 = vpow2.f32 %v527_v58 }
 0x1f7   :  { %v525_v53 = vmul.f32 1.442695, %v509_v33  ;;  %v472_v50 = vpop.permute.xlu1 %471 }
 0x1f8   :  { %v487_v40 = vpop.permute.xlu0 %486  ;;  %v517_v60 = vsub.f32 %v2158_v5, %v472_v50 }
 0x1f9   :  { %1674 = vpow2.f32 %v525_v53  ;;  %v520_v16 = vsub.f32 %v2171_v8, %v487_v40 }
 0x1fa   :  { %v541_v42 = vmul.f32 1.442695, %v517_v60 }
 0x1fb   :  { %v447_v49 = vpop.permute.xlu1 %446  ;;  %v547_v35 = vmul.f32 1.442695, %v520_v16 }
 0x1fc   :  { %v512_v29 = vsub.f32 %v2169_v7, %v447_v49  ;;  %1676 = vpow2.f32 %v541_v42 }
 0x1fe   :  { %v531_v51 = vmul.f32 1.442695, %v512_v29 }
 0x1ff   :  { %v1671_v2 = vpop.eup %1670  ;;  %v442_v32 = vpop.permute.xlu1 %441 }
 0x200   :  { %v1673_v46 = vpop.eup %1672  ;;  %v735_v4 = vsel %vm2524_vm0, %v1671_v2, 0.0  ;;  %1678 = vpow2.f32 %v531_v51  ;;  %v511_v54 = vsub.f32 %v2173_v9, %v442_v32 }
 0x201   :  { %824 = vadd.xlane.f32.xlu1 %v735_v4  ;;  %v727_v50 = vsel %vm1973_vm6, %v1673_v46, 0.0  ;;  %1680 = vpow2.f32 %v547_v35  ;;  %vm2971_vm6 = vnez %v2962_v37  ;;  %v895_v37 = vmul.f32 %v2154_v3, %v2548_v39 }
 0x202   :  { %808 = vadd.xlane.f32.xlu0 %v727_v50  ;;  %v529_v7 = vmul.f32 1.442695, %v511_v54  ;;  %v896_v3 = vmul.f32 %v2477_v31, %v2175_v10  ;;  %v900_v39 = vmul.f32 %v2498_v43, %v2204_v20 }
 0x203   :  { %v1675_v58 = vpop.eup %1674  ;;  %v482_v33 = vpop.permute.xlu1 %481 }
 0x204   :  { %v497_v49 = vpop.permute.xlu0 %496  ;;  %v726_v53 = vsel %vm1964_vm4, %v1675_v58, 0.0  ;;  %1682 = vpow2.f32 %v529_v7  ;;  %v519_v22 = vsub.f32 %v2175_v10, %v482_v33  ;;  %vm2970_vm4 = vnez %v2958_v25 }
 0x205   :  { %806 = vadd.xlane.f32.xlu1 %v726_v53  ;;  %v522_v40 = vsub.f32 %v2183_v12, %v497_v49  ;;  %v893_v25 = vmul.f32 %v2198_v17, %v2531_v13 }
 0x206   :  { %v545_v9 = vmul.f32 1.442695, %v519_v22  ;;  %v1677_v60 = vpop.eup %1676 }
 0x207   :  { %v457_v16 = vpop.permute.xlu1 %456  ;;  %v734_v42 = vsel %vm2439_vm7, %v1677_v60, 0.0  ;;  %v551_v2 = vmul.f32 1.442695, %v522_v40  ;;  %vm2975_vm7 = vcmask 7168  }
 0x208   :  { %v514_v48 = vsub.f32 %v2181_v11, %v457_v16  ;;  %1684 = vpow2.f32 %v545_v9  ;;  %822 = vadd.xlane.f32.xlu0 %v734_v42  ;;  %vm2977_vm9 = vmmov %vm2975_vm7 }
 0x209   :  { %vm2978_vm5 = vmmov %vm2975_vm7 }
 0x20a   :  { %v1679_v29 = vpop.eup %1678  ;;  %v535_v44 = vmul.f32 1.442695, %v514_v48  ;;  %vm2979_vm0 = vmmov %vm2978_vm5 }
 0x20b   :  { %v452_v35 = vpop.permute.xlu1 %451  ;;  %v729_v51 = vsel %vm2001_vm14, %v1679_v29, 0.0  ;;  %v1681_v46 = vpop.eup %1680  ;;  %vm2973_vm14 = vnez %v2952_v45  ;;  %v897_v45 = vmul.f32 %v2171_v8, %v2562_v26  ;;  %v898_v8 = vmul.f32 %v2491_v34, %v2190_v15  ;;  %v978_v26 = vld [vmem:[#allocation5 + $0x60] sm:$0xff]  ;;  %vm2981_vm8 = vmmov %vm2979_vm0 }
 0x20c   :  { %1686 = vpow2.f32 %v535_v44  ;;  %v513_v32 = vsub.f32 %v2188_v14, %v452_v35  ;;  %812 = vadd.xlane.f32.xlu1 %v729_v51  ;;  %v507_v54 = vpop.permute.xlu0 %506  ;;  %v737_v50 = vsel %vm2542_vm10, %v1681_v46, 0.0  ;;  %vm2980_vm10 = vmmov %vm2979_vm0 }
 0x20d   :  { %1688 = vpow2.f32 %v551_v2  ;;  %v524_v56 = vsub.f32 %v2200_v18, %v507_v54  ;;  %vm2982_vm11 = vmmov %vm2979_vm0 }
 0x20e   :  { %v1683_v4 = vpop.eup %1682  ;;  %v533_v11 = vmul.f32 1.442695, %v513_v32  ;;  %vm2984_vm3 = vmmov %vm2979_vm0 }
 0x20f   :  { %v492_v21 = vpop.permute.xlu1 %491  ;;  %v728_v58 = vsel %vm1991_vm13, %v1683_v4, 0.0  ;;  %v555_v52 = vmul.f32 1.442695, %v524_v56  ;;  %vm2972_vm13 = vnez %v2949_v63  ;;  %v892_v63 = vmul.f32 %v2446_v47, %v2202_v19  ;;  %v974_v47 = vld [vmem:[#allocation5 + $0x40] sm:$0xff]  ;;  %v971_v56 = vld [vmem:[#allocation5 + $0x28] sm:$0xff] }
 0x210   :  { %v521_v7 = vsub.f32 %v2190_v15, %v492_v21  ;;  %828 = vadd.xlane.f32.xlu1 %v737_v50  ;;  %810 = vadd.xlane.f32.xlu0 %v728_v58  ;;  %1690 = vpow2.f32 %v533_v11  ;;  %v894_v50 = vmul.f32 %v2462_v41, %v2158_v5 }
 0x212   :  { %v549_v14 = vmul.f32 1.442695, %v521_v7  ;;  %v1685_v49 = vpop.eup %1684  ;;  %v870_v7 = vld [vmem:[#allocation4] sm:$0xff] }
 0x213   :  { %v467_v33 = vpop.permute.xlu1 %466  ;;  %v736_v24 = vsel %vm2455_vm15, %v1685_v49, 0.0  ;;  %vm2976_vm15 = vmmov %vm2975_vm7 }
 0x214   :  { %1692 = vpow2.f32 %v549_v14  ;;  %v516_v53 = vsub.f32 %v2198_v17, %v467_v33  ;;  %826 = vadd.xlane.f32.xlu0 %v736_v24  ;;  %v899_v17 = vmul.f32 %v2183_v12, %v2568_v30  ;;  %v976_v12 = vld [vmem:[#allocation5 + $0x50] sm:$0xff] }
 0x215   :  { %v980_v30 = vld [vmem:[#allocation5 + $0x70] sm:$0xff] }
 0x216   :  { %v1687_v22 = vpop.eup %1686  ;;  %v539_v40 = vmul.f32 1.442695, %v516_v53  ;;  %v872_v33 = vld [vmem:[#allocation4 + $0x10] sm:$0xff]  ;;  %v973_v53 = vld [vmem:[#allocation5 + $0x38] sm:$0xff] }
 0x217   :  { %v462_v9 = vpop.permute.xlu1 %461  ;;  %v731_v60 = vsel %vm2165_vm12, %v1687_v22, 0.0  ;;  %v1689_v16 = vpop.eup %1688  ;;  %vm2974_vm12 = vnez %v2960_v28  ;;  %v972_v28 = vld [vmem:[#allocation5 + $0x30] sm:$0xff] }
 0x218   :  { %1694 = vpow2.f32 %v539_v40  ;;  %v515_v18 = vsub.f32 %v2202_v19, %v462_v9  ;;  %816 = vadd.xlane.f32.xlu1 %v731_v60  ;;  %v739_v23 = vsel %vm2557_vm1, %v1689_v16, 0.0  ;;  %v874_v9 = vld [vmem:[#allocation4 + $0x20] sm:$0xff]  ;;  %v975_v60 = vld [vmem:[#allocation5 + $0x48] sm:$0xff]  ;;  %vm2983_vm1 = vmmov %vm2979_vm0 }
 0x219   :  { %1696 = vpow2.f32 %v555_v52 }
 0x21a   :  { %v537_v48 = vmul.f32 1.442695, %v515_v18  ;;  %v1691_v42 = vpop.eup %1690 }
 0x21b   :  { %v502_v29 = vpop.permute.xlu1 %501  ;;  %v730_v6 = vsel %vm2969_vm2, %v1691_v42, 0.0  ;;  %vm2985_vm2 = vmmov %vm2979_vm0 }
 0x21c   :  { %1698 = vpow2.f32 %v537_v48  ;;  %v523_v2 = vsub.f32 %v2204_v20, %v502_v29  ;;  %832 = vadd.xlane.f32.xlu1 %v739_v23  ;;  %814 = vadd.xlane.f32.xlu0 %v730_v6  ;;  %v977_v29 = vld [vmem:[#allocation5 + $0x58] sm:$0xff]  ;;  %v979_v6 = vld [vmem:[#allocation5 + $0x68] sm:$0xff] }
 0x21e   :  { %v1693_v44 = vpop.eup %1692  ;;  %v553_v35 = vmul.f32 1.442695, %v523_v2 }
 0x21f   :  { %v738_v51 = vsel %vm2970_vm4, %v1693_v44, 0.0  ;;  %vm2986_vm4 = vmmov %vm2979_vm0 }
 0x220   :  { %1700 = vpow2.f32 %v553_v35  ;;  %830 = vadd.xlane.f32.xlu0 %v738_v51  ;;  %v981_v51 = vld [vmem:[#allocation5 + $0x78] sm:$0xff] }
 0x222   :  { %v1695_v46 = vpop.eup %1694 }
 0x223   :  { %v733_v62 = vsel %vm2971_vm6, %v1695_v46, 0.0  ;;  %v1697_v32 = vpop.eup %1696  ;;  %vm2987_vm6 = vmmov %vm2979_vm0 }
 0x224   :  { %820 = vadd.xlane.f32.xlu1 %v733_v62  ;;  %v741_v11 = vsel %vm2972_vm13, %v1697_v32, 0.0  ;;  %v871_v32 = vld [vmem:[#allocation4 + $0x8] sm:$0xff]  ;;  %vm2988_vm13 = vmmov %vm2979_vm0 }
 0x226   :  { %v1699_v4 = vpop.eup %1698 }
 0x227   :  { %v732_v57 = vsel %vm2973_vm14, %v1699_v4, 0.0  ;;  %vm2989_vm14 = vmmov %vm2979_vm0 }
 0x228   :  { %836 = vadd.xlane.f32.xlu1 %v741_v11  ;;  %818 = vadd.xlane.f32.xlu0 %v732_v57  ;;  %v873_v57 = vld [vmem:[#allocation4 + $0x18] sm:$0xff] }
 0x22a   :  { %v1701_v54 = vpop.eup %1700 }
 0x22b   :  { %v740_v21 = vsel %vm2974_vm12, %v1701_v54, 0.0  ;;  %vm2990_vm12 = vmmov %vm2979_vm0 }
 0x22c   :  { %916 = vadd.xlane.f32.xlu1 %v893_v25  ;;  %834 = vadd.xlane.f32.xlu0 %v740_v21  ;;  %v875_v21 = vld [vmem:[#allocation4 + $0x28] sm:$0xff] }
 0x230   :  { %920 = vadd.xlane.f32.xlu1 %v895_v37  ;;  %914 = vadd.xlane.f32.xlu0 %v892_v63 }
 0x234   :  { %924 = vadd.xlane.f32.xlu1 %v897_v45  ;;  %918 = vadd.xlane.f32.xlu0 %v894_v50  ;;  %v2992_v45 = vsub.f32 %v2244_v59, %v2250_v1 }
 0x236   :  { %v398_v50 = vmul.f32 1.442695, %v2992_v45  ;;  %v776_v45 = vld [vmem:[#allocation3 + $0x10] sm:$0xff] }
 0x238   :  { %928 = vadd.xlane.f32.xlu1 %v899_v17  ;;  %922 = vadd.xlane.f32.xlu0 %v896_v3  ;;  %v2993_v17 = vsub.f32 %v2242_v55, %v2247_v0  ;;  %1702 = vpow2.f32 %v398_v50  ;;  %v2994_v3 = vsub.f32 %v2252_v27, %v2267_v36  ;;  %v3000_v0 = vld [vmem:[#allocation8_spill] sm:$0xff]  ;;  %v775_v27 = vld [vmem:[#allocation3 + $0x8] sm:$0xff]  ;;  %v785_v50 = vld [vmem:[#allocation3 + $0x58] sm:$0xff] }
 0x239   :  { %v995_v13 = vpop.xlane.xlu0 %994  ;;  %v3003_v36 = vld [vmem:[#allocation12_spill] sm:$0xff] }
 0x23a   :  { %v1020_v19 = vadd.f32 %v995_v13, %v972_v28  ;;  %v382_v28 = vmul.f32 1.442695, %v2993_v17  ;;  %v380_v13 = vmul.f32 1.442695, %v2994_v3 }
 0x23c   :  { %1036 = vst.msk [vmem:[#allocation5 + $0x30] sm:$0xff] %vm2975_vm7, %v1020_v19  ;;  %932 = vadd.xlane.f32.xlu1 %v2416_v61  ;;  %926 = vadd.xlane.f32.xlu0 %v898_v8  ;;  %vm2991_vm7 = vmmov %vm2979_vm0  ;;  %1704 = vpow2.f32 %v382_v28  ;;  %v2995_v19 = vld [vmem:[#allocation9_spill] sm:$0xff]  ;;  %v1341_v28 = vld [vmem:[#allocation5 + $0x8] sm:$0xff] }
 0x23d   :  { %v999_v5 = vpop.xlane.xlu0 %998  ;;  %1706 = vpow2.f32 %v380_v13  ;;  %v3021_v13 = vld [vmem:[#allocation20_spill] sm:$0xff] }
 0x23e   :  { %v1022_v41 = vadd.f32 %v999_v5, %v974_v47  ;;  %v2996_v47 = vsub.f32 %v2272_v38, %v2995_v19  ;;  %v2997_v5 = vld [vmem:[#allocation6_spill] sm:$0xff] }
 0x23f   :  { %v3022_v19 = vld [vmem:[#allocation22_spill] sm:$0xff] }
 0x240   :  { %1038 = vst.msk [vmem:[#allocation5 + $0x40] sm:$0xff] %vm2976_vm15, %v1022_v41  ;;  %930 = vadd.xlane.f32.xlu0 %v900_v39  ;;  %v396_v8 = vmul.f32 1.442695, %v2996_v47  ;;  %v2998_v41 = vld [vmem:[#allocation7_spill] sm:$0xff]  ;;  %vm3009_vm15 = vmmov %vm2979_vm0  ;;  %v3023_v47 = vsub.f32 %v3021_v13, %v3022_v19 }
 0x241   :  { %v1003_v10 = vpop.xlane.xlu0 %1002  ;;  %v783_v39 = vld [vmem:[#allocation3 + $0x48] sm:$0xff] }
 0x242   :  { %v1024_v31 = vadd.f32 %v1003_v10, %v976_v12  ;;  %v2999_v12 = vsub.f32 %v2997_v5, %v2998_v41  ;;  %1708 = vpow2.f32 %v396_v8  ;;  %v1703_v1 = vpop.eup %1702  ;;  %v3001_v10 = vld [vmem:[#allocation10_spill] sm:$0xff]  ;;  %v404_v8 = vmul.f32 1.442695, %v3023_v47 }
 0x243   :  { %v799_v38 = vmul.f32 %v1703_v1, %v783_v39  ;;  %v1340_v39 = vld [vmem:[#allocation5] sm:$0xff] }
 0x244   :  { %1040 = vst.msk [vmem:[#allocation5 + $0x50] sm:$0xff] %vm2977_vm9, %v1024_v31  ;;  %v386_v59 = vmul.f32 1.442695, %v2999_v12  ;;  %v3002_v31 = vsub.f32 %v3000_v0, %v3001_v10  ;;  %vm3010_vm9 = vmmov %vm2979_vm0  ;;  %v786_v47 = vld [vmem:[#allocation3 + $0x60] sm:$0xff] }
 0x245   :  { %v1007_v15 = vpop.xlane.xlu0 %1006 }
 0x246   :  { %v1026_v34 = vadd.f32 %v1007_v15, %v978_v26  ;;  %v1705_v55 = vpop.eup %1704  ;;  %v402_v26 = vmul.f32 1.442695, %v3002_v31  ;;  %1710 = vpow2.f32 %v386_v59  ;;  %v3004_v15 = vld [vmem:[#allocation14_spill] sm:$0xff]  ;;  %v784_v31 = vld [vmem:[#allocation3 + $0x50] sm:$0xff] }
 0x248   :  { %1042 = vst.msk [vmem:[#allocation5 + $0x60] sm:$0xff] %vm2978_vm5, %v1026_v34  ;;  %v3005_v34 = vsub.f32 %v3003_v36, %v3004_v15  ;;  %1712 = vpow2.f32 %v402_v26  ;;  %vm3014_vm5 = vmmov %vm2979_vm0  ;;  %v3025_v26 = vld [vmem:[#allocation23_spill] sm:$0xff] }
 0x249   :  { %v1011_v61 = vpop.xlane.xlu0 %1010 }
 0x24a   :  { %v1028_v58 = vadd.f32 %v1011_v61, %v980_v30  ;;  %v384_v30 = vmul.f32 1.442695, %v3005_v34  ;;  %v1707_v61 = vpop.eup %1706 }
 0x24c   :  { %1044 = vst.msk [vmem:[#allocation5 + $0x70] sm:$0xff] %vm2979_vm0, %v1028_v58  ;;  %v791_v58 = vmul.f32 %v1705_v55, %v775_v27  ;;  %1714 = vpow2.f32 %v384_v30  ;;  %v1501_v55 = vadd.f32 1e-05, %v1341_v28  ;;  %v3026_v27 = vld [vmem:[#allocation25_spill] sm:$0xff]  ;;  %v1500_v30 = vadd.f32 1e-05, %v1340_v39 }
 0x24d   :  { %v903_v20 = vpop.xlane.xlu0 %902  ;;  %v993_v14 = vpop.xlane.xlu1 %992  ;;  %v3027_v36 = vsub.f32 %v3025_v26, %v3026_v27  ;;  %v781_v26 = vld [vmem:[#allocation3 + $0x38] sm:$0xff] }
 0x24e   :  { %v934_v43 = vadd.f32 %v903_v20, %v870_v7  ;;  %v1019_v49 = vadd.f32 %v993_v14, %v971_v56  ;;  %v774_v56 = vld [vmem:[#allocation3] sm:$0xff] }
 0x24f   :  { %v394_v15 = vmul.f32 1.442695, %v3027_v36 }
 0x250   :  { %950 = vst.msk [vmem:[#allocation4] sm:$0xff] %vm2980_vm10, %v934_v43  ;;  %vm3024_vm10 = vmmov %vm2979_vm0 }
 0x251   :  { %1035 = vst.msk [vmem:[#allocation5 + $0x28] sm:$0xff] %vm2981_vm8, %v1019_v49  ;;  %v907_v24 = vpop.xlane.xlu0 %906  ;;  %v997_v52 = vpop.xlane.xlu1 %996  ;;  %v3006_v49 = vld [vmem:[#allocation11_spill] sm:$0xff]  ;;  %vm3028_vm8 = vmmov %vm2979_vm0 }
 0x252   :  { %v936_v22 = vadd.f32 %v907_v24, %v872_v33  ;;  %v1021_v40 = vadd.f32 %v997_v52, %v973_v53  ;;  %v3007_v33 = vld [vmem:[#allocation13_spill] sm:$0xff] }
 0x253   :  { %v3008_v53 = vsub.f32 %v3006_v49, %v3007_v33  ;;  %v3033_v49 = vld [vmem:[#allocation27_spill] sm:$0xff]  ;;  %v3034_v33 = vld [vmem:[#allocation29_spill] sm:$0xff] }
 0x254   :  { %952 = vst.msk [vmem:[#allocation4 + $0x10] sm:$0xff] %vm2982_vm11, %v936_v22  ;;  %v790_v22 = vmul.f32 %v1707_v61, %v774_v56  ;;  %vm3029_vm11 = vmmov %vm2979_vm0  ;;  %v779_v61 = vld [vmem:[#allocation3 + $0x28] sm:$0xff] }
 0x255   :  { %1037 = vst.msk [vmem:[#allocation5 + $0x38] sm:$0xff] %vm2983_vm1, %v1021_v40  ;;  %v911_v16 = vpop.xlane.xlu0 %910  ;;  %v1001_v48 = vpop.xlane.xlu1 %1000  ;;  %v400_v24 = vmul.f32 1.442695, %v3008_v53  ;;  %v3035_v53 = vsub.f32 %v3033_v49, %v3034_v33  ;;  %vm3036_vm1 = vmmov %vm2979_vm0 }
 0x256   :  { %v938_v18 = vadd.f32 %v911_v16, %v874_v9  ;;  %v1023_v42 = vadd.f32 %v1001_v48, %v975_v60  ;;  %v1709_v40 = vpop.eup %1708  ;;  %v782_v60 = vld [vmem:[#allocation3 + $0x40] sm:$0xff]  ;;  %v3011_v16 = vld [vmem:[#allocation15_spill] sm:$0xff] }
 0x257   :  { %1716 = vpow2.f32 %v400_v24  ;;  %v410_v24 = vmul.f32 1.442695, %v3035_v53 }
 0x258   :  { %954 = vst.msk [vmem:[#allocation4 + $0x20] sm:$0xff] %vm2984_vm3, %v938_v18  ;;  %v3012_v18 = vld [vmem:[#allocation17_spill] sm:$0xff]  ;;  %vm3040_vm3 = vmmov %vm2979_vm0 }
 0x259   :  { %1039 = vst.msk [vmem:[#allocation5 + $0x48] sm:$0xff] %vm2985_vm2, %v1023_v42  ;;  %v1005_v23 = vpop.xlane.xlu1 %1004  ;;  %v3013_v48 = vsub.f32 %v3011_v16, %v3012_v18  ;;  %v1405_v18 = vld [vmem:[#allocation2 + $0x8] sm:$0xff]  ;;  %vm3041_vm2 = vmmov %vm2979_vm0 }
 0x25a   :  { %v1025_v2 = vadd.f32 %v1005_v23, %v977_v29  ;;  %v1711_v29 = vpop.eup %1710  ;;  %v798_v23 = vmul.f32 %v1709_v40, %v782_v60 }
 0x25b   :  { %v390_v42 = vmul.f32 1.442695, %v3013_v48 }
 0x25c   :  { %1041 = vst.msk [vmem:[#allocation5 + $0x58] sm:$0xff] %vm2986_vm4, %v1025_v2  ;;  %v777_v2 = vld [vmem:[#allocation3 + $0x18] sm:$0xff]  ;;  %vm3042_vm4 = vmmov %vm2979_vm0 }
 0x25d   :  { %v1009_v44 = vpop.xlane.xlu1 %1008  ;;  %1718 = vpow2.f32 %v390_v42  ;;  %v787_v42 = vld [vmem:[#allocation3 + $0x68] sm:$0xff] }
 0x25e   :  { %v1027_v35 = vadd.f32 %v1009_v44, %v979_v6  ;;  %v3015_v6 = vld [vmem:[#allocation16_spill] sm:$0xff]  ;;  %v3016_v44 = vld [vmem:[#allocation18_spill] sm:$0xff] }
 0x260   :  { %1043 = vst.msk [vmem:[#allocation5 + $0x68] sm:$0xff] %vm2987_vm6, %v1027_v35  ;;  %v3017_v35 = vsub.f32 %v3015_v6, %v3016_v44  ;;  %v778_v6 = vld [vmem:[#allocation3 + $0x20] sm:$0xff]  ;;  %v2714_v44 = vld [vmem:[#allocation5 + $0x18] sm:$0xff]  ;;  %vm3043_vm6 = vmmov %vm2979_vm0 }
 0x261   :  { %v1013_v46 = vpop.xlane.xlu1 %1012 }
 0x262   :  { %v1029_v62 = vadd.f32 %v1013_v46, %v981_v51  ;;  %v388_v51 = vmul.f32 1.442695, %v3017_v35  ;;  %v3037_v35 = vld [vmem:[#allocation28_spill] sm:$0xff] }
 0x264   :  { %1045 = vst.msk [vmem:[#allocation5 + $0x78] sm:$0xff] %vm2988_vm13, %v1029_v62  ;;  %v3018_v62 = vld [vmem:[#allocation19_spill] sm:$0xff]  ;;  %vm3044_vm13 = vmmov %vm2979_vm0 }
 0x265   :  { %v905_v4 = vpop.xlane.xlu1 %904 }
 0x266   :  { %v935_v11 = vadd.f32 %v905_v4, %v871_v32  ;;  %v3019_v32 = vld [vmem:[#allocation21_spill] sm:$0xff] }
 0x267   :  { %v3020_v4 = vsub.f32 %v3018_v62, %v3019_v32 }
 0x268   :  { %951 = vst.msk [vmem:[#allocation4 + $0x8] sm:$0xff] %vm2989_vm14, %v935_v11  ;;  %vm3045_vm14 = vmmov %vm2979_vm0 }
 0x269   :  { %v909_v54 = vpop.xlane.xlu1 %908  ;;  %v406_v11 = vmul.f32 1.442695, %v3020_v4 }
 0x26a   :  { %v937_v25 = vadd.f32 %v909_v54, %v873_v57  ;;  %v1713_v54 = vpop.eup %1712 }
 0x26b   :  { %v801_v41 = vmul.f32 %v1713_v54, %v785_v50  ;;  %v2720_v50 = vld [vmem:[#allocation5 + $0x10] sm:$0xff] }
 0x26c   :  { %953 = vst.msk [vmem:[#allocation4 + $0x18] sm:$0xff] %vm2990_vm12, %v937_v25  ;;  %vm3046_vm12 = vmmov %vm2979_vm0 }
 0x26d   :  { %v913_v37 = vpop.xlane.xlu1 %912 }
 0x26e   :  { %v939_v63 = vadd.f32 %v913_v37, %v875_v21  ;;  %v793_v21 = vmul.f32 %v1711_v29, %v777_v2  ;;  %v1715_v37 = vpop.eup %1714 }
 0x26f   :  { %v792_v5 = vmul.f32 %v1715_v37, %v776_v45  ;;  %v1717_v1 = vpop.eup %1716 }
 0x270   :  { %955 = vst.msk [vmem:[#allocation4 + $0x28] sm:$0xff] %vm2991_vm7, %v939_v63  ;;  %v1719_v34 = vpop.eup %1718  ;;  %vm3047_vm7 = vmmov %vm2979_vm0 }
 0x271   :  { %v795_v60 = vmul.f32 %v1719_v34, %v779_v61 }
 0x28e   :  { %v825_v7 = vpop.xlane.xlu1 %824 }
 0x28f   :  { %v809_v20 = vpop.xlane.xlu0 %808  ;;  %v847_v43 = vadd.f32 %v825_v7, %v799_v38  ;;  %v800_v38 = vmul.f32 %v1717_v1, %v784_v31  ;;  %v3031_v7 = vld [vmem:[#allocation26_spill] sm:$0xff] }
 0x290   :  { %v839_v14 = vadd.f32 %v809_v20, %v791_v58  ;;  %v3030_v58 = vld [vmem:[#allocation24_spill] sm:$0xff] }
 0x291   :  { %863 = vst.msk [vmem:[#allocation3 + $0x48] sm:$0xff] %vm3009_vm15, %v847_v43  ;;  %v3032_v56 = vsub.f32 %v3030_v58, %v3031_v7  ;;  %vm3048_vm15 = vmmov %vm2979_vm0 }
 0x292   :  { %855 = vst.msk [vmem:[#allocation3 + $0x8] sm:$0xff] %vm3010_vm9, %v839_v14  ;;  %v807_v52 = vpop.xlane.xlu1 %806  ;;  %vm3049_vm9 = vmmov %vm2979_vm0 }
 0x293   :  { %v838_v9 = vadd.f32 %v807_v52, %v790_v22  ;;  %v392_v20 = vmul.f32 1.442695, %v3032_v56 }
 0x295   :  { %854 = vst.msk [vmem:[#allocation3] sm:$0xff] %vm3014_vm5, %v838_v9  ;;  %v823_v46 = vpop.xlane.xlu0 %822  ;;  %vm3050_vm5 = vmmov %vm2979_vm0 }
 0x296   :  { %v846_v57 = vadd.f32 %v823_v46, %v798_v23 }
 0x298   :  { %862 = vst.msk [vmem:[#allocation3 + $0x40] sm:$0xff] %vm2979_vm0, %v846_v57  ;;  %v1365_v1 = vld [vmem:[#allocation3 + $0x48] sm:$0xff] }
 0x299   :  { %v1357_v25 = vld [vmem:[#allocation3 + $0x8] sm:$0xff]  ;;  %v813_v63 = vpop.xlane.xlu1 %812 }
 0x29a   :  { %1720 = vlog2.f32 %v1357_v25  ;;  %v841_v17 = vadd.f32 %v813_v63, %v793_v21  ;;  %v1437_v25 = vld [vmem:[#allocation4 + $0x8] sm:$0xff] }
 0x29b   :  { %1722 = vpow2.f32 %v388_v51  ;;  %v3038_v51 = vld [vmem:[#allocation30_spill] sm:$0xff] }
 0x29c   :  { %1724 = vpow2.f32 %v406_v11  ;;  %v1356_v3 = vld [vmem:[#allocation3] sm:$0xff]  ;;  %857 = vst.msk [vmem:[#allocation3 + $0x18] sm:$0xff] %vm3024_vm10, %v841_v17  ;;  %v3039_v46 = vsub.f32 %v3037_v35, %v3038_v51  ;;  %v1503_v17 = vadd.f32 1e-05, %v2714_v44  ;;  %v1439_v51 = vld [vmem:[#allocation4 + $0x18] sm:$0xff]  ;;  %vm3051_vm10 = vmmov %vm2979_vm0 }
 0x29d   :  { %1726 = vlog2.f32 %v1356_v3  ;;  %v811_v12 = vpop.xlane.xlu0 %810  ;;  %v829_v59 = vpop.xlane.xlu1 %828  ;;  %v1404_v11 = vld [vmem:[#allocation2] sm:$0xff] }
 0x29e   :  { %v840_v0 = vadd.f32 %v811_v12, %v792_v5  ;;  %v849_v10 = vadd.f32 %v829_v59, %v801_v41  ;;  %1728 = vpow2.f32 %v404_v8  ;;  %v408_v62 = vmul.f32 1.442695, %v3039_v46  ;;  %v2723_v8 = vld [vmem:[#allocation5 + $0x20] sm:$0xff] }
 0x29f   :  { %1730 = vrcp.f32 %v1501_v55  ;;  %v1436_v12 = vld [vmem:[#allocation4] sm:$0xff]  ;;  %v1504_v36 = vadd.f32 1e-05, %v2723_v8 }
 0x2a0   :  { %856 = vst.msk [vmem:[#allocation3 + $0x10] sm:$0xff] %vm3028_vm8, %v840_v0  ;;  %1732 = vpow2.f32 %v394_v15  ;;  %v1502_v0 = vadd.f32 1e-05, %v2720_v50  ;;  %v1364_v49 = vld [vmem:[#allocation3 + $0x40] sm:$0xff]  ;;  %vm3052_vm8 = vmmov %vm2979_vm0 }
 0x2a1   :  { %865 = vst.msk [vmem:[#allocation3 + $0x58] sm:$0xff] %vm3029_vm11, %v849_v10  ;;  %v827_v43 = vpop.xlane.xlu0 %826  ;;  %v2741_v35 = vld [vmem:[#allocation5 + $0x40] sm:$0xff]  ;;  %vm3053_vm11 = vmmov %vm2979_vm0 }
 0x2a2   :  { %v848_v52 = vadd.f32 %v827_v43, %v800_v38  ;;  %v2731_v38 = vld [vmem:[#allocation5 + $0x28] sm:$0xff]  ;;  %v1407_v43 = vld [vmem:[#allocation2 + $0x18] sm:$0xff] }
 0x2a3   :  { %v1359_v22 = vld [vmem:[#allocation3 + $0x18] sm:$0xff] }
 0x2a4   :  { %v1721_v14 = vpop.eup %1720  ;;  %1734 = vlog2.f32 %v1359_v22  ;;  %864 = vst.msk [vmem:[#allocation3 + $0x50] sm:$0xff] %vm3036_vm1, %v848_v52  ;;  %vm3054_vm1 = vmmov %vm2979_vm0 }
 0x2a5   :  { %v1723_v40 = vpop.eup %1722  ;;  %v1375_v9 = vmul.f32 0.6931472, %v1721_v14  ;;  %1736 = vrcp.f32 %v1500_v30  ;;  %v817_v48 = vpop.xlane.xlu1 %816 }
 0x2a6   :  { %v1725_v16 = vpop.eup %1724  ;;  %1738 = vpow2.f32 %v392_v20  ;;  %v843_v2 = vadd.f32 %v817_v48, %v795_v60  ;;  %v794_v37 = vmul.f32 %v1723_v40, %v778_v6  ;;  %v789_v60 = vld [vmem:[#allocation3 + $0x78] sm:$0xff]  ;;  %v1505_v48 = vadd.f32 1e-05, %v2731_v38 }
 0x2a7   :  { %v1727_v29 = vpop.eup %1726  ;;  %v1421_v23 = vadd.f32 %v1405_v18, %v1375_v9  ;;  %1740 = vpow2.f32 %v410_v24  ;;  %v1358_v4 = vld [vmem:[#allocation3 + $0x10] sm:$0xff]  ;;  %v803_v54 = vmul.f32 %v1725_v16, %v787_v42 }
 0x2a8   :  { %v1373_v32 = vmul.f32 0.6931472, %v1727_v29  ;;  %1742 = vlog2.f32 %v1358_v4  ;;  %859 = vst.msk [vmem:[#allocation3 + $0x28] sm:$0xff] %vm3040_vm3, %v843_v2  ;;  %v1729_v45 = vpop.eup %1728  ;;  %v1367_v52 = vld [vmem:[#allocation3 + $0x58] sm:$0xff]  ;;  %v780_v9 = vld [vmem:[#allocation3 + $0x30] sm:$0xff]  ;;  %vm3055_vm3 = vmmov %vm2979_vm0 }
 0x2a9   :  { %v1453_v57 = vmul.f32 %v1421_v23, %v1341_v28  ;;  %v833_v63 = vpop.xlane.xlu1 %832  ;;  %v815_v13 = vpop.xlane.xlu0 %814  ;;  %1744 = vpow2.f32 %v408_v62  ;;  %v802_v31 = vmul.f32 %v1729_v45, %v786_v47  ;;  %v1406_v29 = vld [vmem:[#allocation2 + $0x10] sm:$0xff] }
 0x2aa   :  { %v1420_v21 = vadd.f32 %v1404_v11, %v1373_v32  ;;  %v851_v19 = vadd.f32 %v833_v63, %v803_v54  ;;  %v842_v5 = vadd.f32 %v815_v13, %v794_v37  ;;  %v1731_v41 = vpop.eup %1730  ;;  %1746 = vrcp.f32 %v1503_v17  ;;  %v2744_v11 = vld [vmem:[#allocation5 + $0x50] sm:$0xff]  ;;  %v2750_v63 = vld [vmem:[#allocation5 + $0x60] sm:$0xff] }
 0x2ab   :  { %v1469_v3 = vsub.f32 %v1437_v25, %v1453_v57  ;;  %v1733_v55 = vpop.eup %1732  ;;  %1748 = vlog2.f32 %v1365_v1  ;;  %v1366_v54 = vld [vmem:[#allocation3 + $0x50] sm:$0xff]  ;;  %v1508_v13 = vadd.f32 1e-05, %v2741_v35 }
 0x2ac   :  { %v1452_v28 = vmul.f32 %v1420_v21, %v1340_v39  ;;  %867 = vst.msk [vmem:[#allocation3 + $0x68] sm:$0xff] %vm3041_vm2, %v851_v19  ;;  %v2729_v39 = vld [vmem:[#allocation5 + $0x30] sm:$0xff]  ;;  %v797_v33 = vmul.f32 %v1733_v55, %v781_v26  ;;  %v2753_v19 = vld [vmem:[#allocation5 + $0x48] sm:$0xff]  ;;  %vm3056_vm2 = vmmov %vm2979_vm0 }
 0x2ad   :  { %v1485_v59 = vadd.f32 1e-05, %v1469_v3  ;;  %858 = vst.msk [vmem:[#allocation3 + $0x20] sm:$0xff] %vm3042_vm4, %v842_v5  ;;  %v831_v34 = vpop.xlane.xlu0 %830  ;;  %v1506_v18 = vadd.f32 1e-05, %v2729_v39  ;;  %v788_v37 = vld [vmem:[#allocation3 + $0x70] sm:$0xff]  ;;  %vm3057_vm4 = vmmov %vm2979_vm0 }
 0x2ae   :  { %v1468_v10 = vsub.f32 %v1436_v12, %v1452_v28  ;;  %v1735_v27 = vpop.eup %1734  ;;  %v850_v56 = vadd.f32 %v831_v34, %v802_v31  ;;  %v877_v5 = vld [vmem:[#allocation4 + $0x38] sm:$0xff]  ;;  %v1510_v12 = vadd.f32 1e-05, %v2744_v11  ;;  %v1509_v34 = vadd.f32 1e-05, %v2753_v19 }
 0x2af   :  { %v1519_v15 = vmul.f32 %v1731_v41, %v1485_v59  ;;  %v1737_v30 = vpop.eup %1736  ;;  %v1379_v58 = vmul.f32 0.6931472, %v1735_v27  ;;  %v1361_v7 = vld [vmem:[#allocation3 + $0x28] sm:$0xff]  ;;  %v1438_v59 = vld [vmem:[#allocation4 + $0x10] sm:$0xff] }
 0x2b0   :  { %v1484_v61 = vadd.f32 1e-05, %v1468_v10  ;;  %v1739_v20 = vpop.eup %1738  ;;  %1750 = vlog2.f32 %v1361_v7  ;;  %866 = vst.msk [vmem:[#allocation3 + $0x60] sm:$0xff] %vm3043_vm6, %v850_v56  ;;  %v1512_v10 = vadd.f32 1e-05, %v2750_v63  ;;  %v879_v7 = vld [vmem:[#allocation4 + $0x48] sm:$0xff]  ;;  %vm3058_vm6 = vmmov %vm2979_vm0 }
 0x2b1   :  { %v1549_v14 = vmul.f32 -1.0, %v1519_v15  ;;  %v1741_v53 = vpop.eup %1740  ;;  %1752 = vrcp.f32 %v1502_v0  ;;  %v1423_v22 = vadd.f32 %v1407_v43, %v1379_v58  ;;  %v821_v40 = vpop.xlane.xlu1 %820  ;;  %v796_v62 = vmul.f32 %v1739_v20, %v780_v9  ;;  %v2760_v15 = vld [vmem:[#allocation5 + $0x38] sm:$0xff]  ;;  %v876_v58 = vld [vmem:[#allocation4 + $0x30] sm:$0xff] }
 0x2b2   :  { %v1517_v24 = vmul.f32 %v1737_v30, %v1484_v61  ;;  %v1743_v16 = vpop.eup %1742  ;;  %1754 = vrcp.f32 %v1504_v36  ;;  %v845_v42 = vadd.f32 %v821_v40, %v797_v33  ;;  %v805_v32 = vmul.f32 %v1741_v53, %v789_v60  ;;  %v1409_v53 = vld [vmem:[#allocation2 + $0x28] sm:$0xff] }
 0x2b3   :  { %1565 = vst.msk [vmem:[%s2874_s4 + $0x8] sm:$0xff] %vm3044_vm13, %v1549_v14  ;;  %1756 = vlog2.f32 %v1364_v49  ;;  %v1455_v2 = vmul.f32 %v1423_v22, %v2714_v44  ;;  %v1377_v6 = vmul.f32 0.6931472, %v1743_v16  ;;  %v1745_v4 = vpop.eup %1744  ;;  %v1369_v45 = vld [vmem:[#allocation3 + $0x68] sm:$0xff]  ;;  %vm3059_vm13 = vmmov %vm2979_vm0 }
 0x2b4   :  { %v1548_v23 = vmul.f32 -1.0, %v1517_v24  ;;  %1758 = vlog2.f32 %v1367_v52  ;;  %v1360_v46 = vld [vmem:[#allocation3 + $0x20] sm:$0xff]  ;;  %861 = vst.msk [vmem:[#allocation3 + $0x38] sm:$0xff] %vm3045_vm14, %v845_v42  ;;  %v1747_v41 = vpop.eup %1746  ;;  %v804_v55 = vmul.f32 %v1745_v4, %v788_v37  ;;  %v2765_v24 = vld [vmem:[#allocation5 + $0x58] sm:$0xff]  ;;  %v1507_v42 = vadd.f32 1e-05, %v2760_v15  ;;  %vm3060_vm14 = vmmov %vm2979_vm0 }
 0x2b5   :  { %v1471_v57 = vsub.f32 %v1439_v51, %v1455_v2  ;;  %v1422_v44 = vadd.f32 %v1406_v29, %v1377_v6  ;;  %1760 = vlog2.f32 %v1360_v46  ;;  %v819_v25 = vpop.xlane.xlu0 %818  ;;  %v837_v21 = vpop.xlane.xlu1 %836  ;;  %v878_v2 = vld [vmem:[#allocation4 + $0x40] sm:$0xff]  ;;  %v1511_v51 = vadd.f32 1e-05, %v2765_v24 }
 0x2b6   :  { %1564 = vst.msk [vmem:[%s2874_s4] sm:$0xff] %vm3046_vm12, %v1548_v23  ;;  %1762 = vrcp.f32 %v1506_v18  ;;  %v844_v17 = vadd.f32 %v819_v25, %v796_v62  ;;  %v853_v3 = vadd.f32 %v837_v21, %v805_v32  ;;  %v1749_v0 = vpop.eup %1748  ;;  %v1441_v25 = vld [vmem:[#allocation4 + $0x28] sm:$0xff]  ;;  %vm3061_vm12 = vmmov %vm2979_vm0 }
 0x2b7   :  { %1764 = vrcp.f32 %v1505_v48  ;;  %v1487_v47 = vadd.f32 1e-05, %v1471_v57  ;;  %v1454_v28 = vmul.f32 %v1422_v44, %v2720_v50  ;;  %v1368_v1 = vld [vmem:[#allocation3 + $0x60] sm:$0xff]  ;;  %v1391_v22 = vmul.f32 0.6931472, %v1749_v0  ;;  %v1413_v48 = vld [vmem:[#allocation2 + $0x48] sm:$0xff] }
 0x2b8   :  { %1766 = vlog2.f32 %v1366_v54  ;;  %860 = vst.msk [vmem:[#allocation3 + $0x30] sm:$0xff] %vm3047_vm7, %v844_v17  ;;  %v881_v57 = vld [vmem:[#allocation4 + $0x58] sm:$0xff]  ;;  %v2778_v54 = vld [vmem:[#allocation5 + $0x68] sm:$0xff]  ;;  %v1408_v17 = vld [vmem:[#allocation2 + $0x20] sm:$0xff] }
 0x2b9   :  { %869 = vst.msk [vmem:[#allocation3 + $0x78] sm:$0xff] %vm3048_vm15, %v853_v3  ;;  %v1523_v31 = vmul.f32 %v1747_v41, %v1487_v47  ;;  %v1470_v26 = vsub.f32 %v1438_v59, %v1454_v28  ;;  %1768 = vlog2.f32 %v1369_v45  ;;  %v835_v27 = vpop.xlane.xlu0 %834  ;;  %v917_v50 = vpop.xlane.xlu1 %916  ;;  %v1429_v37 = vadd.f32 %v1413_v48, %v1391_v22  ;;  %v2782_v3 = vld [vmem:[#allocation5 + $0x78] sm:$0xff]  ;;  %vm3062_vm7 = vmmov %vm2979_vm0 }
 0x2ba   :  { %v1751_v36 = vpop.eup %1750  ;;  %1770 = vlog2.f32 %v1368_v1  ;;  %v852_v30 = vadd.f32 %v835_v27, %v804_v55  ;;  %v941_v61 = vadd.f32 %v917_v50, %v877_v5  ;;  %v880_v55 = vld [vmem:[#allocation4 + $0x50] sm:$0xff]  ;;  %v883_v27 = vld [vmem:[#allocation4 + $0x68] sm:$0xff]  ;;  %vm3063_vm15 = vmmov %vm2979_vm0 }
 0x2bb   :  { %v1753_v56 = vpop.eup %1752  ;;  %1772 = vrcp.f32 %v1508_v13  ;;  %v1551_v20 = vmul.f32 -1.0, %v1523_v31  ;;  %v1486_v43 = vadd.f32 1e-05, %v1470_v26  ;;  %v1383_v14 = vmul.f32 0.6931472, %v1751_v36  ;;  %v1363_v49 = vld [vmem:[#allocation3 + $0x38] sm:$0xff] }
 0x2bc   :  { %v2763_v33 = vpop.eup %1754  ;;  %1774 = vlog2.f32 %v1363_v49  ;;  %868 = vst.msk [vmem:[#allocation3 + $0x70] sm:$0xff] %vm3049_vm9, %v852_v30  ;;  %v1412_v36 = vld [vmem:[#allocation2 + $0x40] sm:$0xff]  ;;  %v1515_v30 = vadd.f32 1e-05, %v2782_v3  ;;  %vm3064_vm9 = vmmov %vm2979_vm0 }
 0x2bd   :  { %957 = vst.msk [vmem:[#allocation4 + $0x38] sm:$0xff] %vm3050_vm5, %v941_v61  ;;  %v1757_v52 = vpop.eup %1756  ;;  %1776 = vrcp.f32 %v1510_v12  ;;  %v1521_v40 = vmul.f32 %v1753_v56, %v1486_v43  ;;  %v1425_v9 = vadd.f32 %v1409_v53, %v1383_v14  ;;  %v915_v60 = vpop.xlane.xlu0 %914  ;;  %v2796_v56 = vld [vmem:[#allocation5 + $0x70] sm:$0xff]  ;;  %vm3065_vm5 = vmmov %vm2979_vm0 }
 0x2be   :  { %1567 = vst.msk [vmem:[%s2874_s4 + $0x18] sm:$0xff] %vm2979_vm0, %v1551_v20  ;;  %v921_v16 = vpop.xlane.xlu1 %920  ;;  %v1759_v18 = vpop.eup %1758  ;;  %1778 = vrcp.f32 %v1512_v10  ;;  %v940_v29 = vadd.f32 %v915_v60, %v876_v58  ;;  %v1513_v10 = vadd.f32 1e-05, %v2778_v54  ;;  %v1461_v58 = vmul.f32 %v1429_v37, %v2753_v19  ;;  %v1440_v20 = vld [vmem:[#allocation4 + $0x20] sm:$0xff] }
 0x2bf   :  { %v943_v23 = vadd.f32 %v921_v16, %v879_v7  ;;  %v1761_v6 = vpop.eup %1760  ;;  %1780 = vrcp.f32 %v1509_v34  ;;  %v1550_v46 = vmul.f32 -1.0, %v1521_v40  ;;  %v1457_v62 = vmul.f32 %v1425_v9, %v2731_v38  ;;  %v1362_v32 = vld [vmem:[#allocation3 + $0x30] sm:$0xff]  ;;  %v1415_v34 = vld [vmem:[#allocation2 + $0x58] sm:$0xff]  ;;  %v882_v16 = vld [vmem:[#allocation4 + $0x60] sm:$0xff] }
 0x2c0   :  { %v1371_v4 = vld [vmem:[#allocation3 + $0x78] sm:$0xff]  ;;  %v2776_v44 = vpop.eup %1762  ;;  %v1381_v21 = vmul.f32 0.6931472, %v1761_v6  ;;  %1782 = vlog2.f32 %v1362_v32  ;;  %956 = vst.msk [vmem:[#allocation4 + $0x30] sm:$0xff] %vm3051_vm10, %v940_v29  ;;  %v1389_v38 = vmul.f32 0.6931472, %v1757_v52  ;;  %vm3066_vm10 = vmmov %vm2979_vm0 }
 0x2c1   :  { %959 = vst.msk [vmem:[#allocation4 + $0x48] sm:$0xff] %vm3052_vm8, %v943_v23  ;;  %v1765_v45 = vpop.eup %1764  ;;  %v1395_v13 = vmul.f32 0.6931472, %v1759_v18  ;;  %v1473_v47 = vsub.f32 %v1441_v25, %v1457_v62  ;;  %1784 = vlog2.f32 %v1371_v4  ;;  %v919_v28 = vpop.xlane.xlu0 %918  ;;  %v885_v18 = vld [vmem:[#allocation4 + $0x78] sm:$0xff]  ;;  %v1514_v62 = vadd.f32 1e-05, %v2796_v56  ;;  %vm3067_vm8 = vmmov %vm2979_vm0 }
 0x2c2   :  { %1566 = vst.msk [vmem:[%s2874_s4 + $0x10] sm:$0xff] %vm3053_vm11, %v1550_v46  ;;  %v925_v5 = vpop.xlane.xlu1 %924  ;;  %v1767_v41 = vpop.eup %1766  ;;  %1786 = vrcp.f32 %v1507_v42  ;;  %v1424_v12 = vadd.f32 %v1408_v17, %v1381_v21  ;;  %v942_v59 = vadd.f32 %v919_v28, %v878_v2  ;;  %v1428_v49 = vadd.f32 %v1412_v36, %v1389_v38  ;;  %v1411_v46 = vld [vmem:[#allocation2 + $0x38] sm:$0xff]  ;;  %v1416_v28 = vld [vmem:[#allocation2 + $0x60] sm:$0xff]  ;;  %vm3068_vm11 = vmmov %vm2979_vm0 }
 0x2c3   :  { %v945_v1 = vadd.f32 %v925_v5, %v881_v57  ;;  %v1769_v0 = vpop.eup %1768  ;;  %1788 = vrcp.f32 %v1511_v51  ;;  %v1489_v31 = vadd.f32 1e-05, %v1473_v47  ;;  %v1370_v26 = vld [vmem:[#allocation3 + $0x70] sm:$0xff]  ;;  %v1393_v43 = vmul.f32 0.6931472, %v1767_v41  ;;  %v1417_v47 = vld [vmem:[#allocation2 + $0x68] sm:$0xff] }
 0x2c4   :  { %v1771_v50 = vpop.eup %1770  ;;  %v1456_v61 = vmul.f32 %v1424_v12, %v2723_v8  ;;  %1790 = vlog2.f32 %v1370_v26  ;;  %958 = vst.msk [vmem:[#allocation4 + $0x40] sm:$0xff] %vm3054_vm1, %v942_v59  ;;  %v1431_v53 = vadd.f32 %v1415_v34, %v1395_v13  ;;  %v1399_v9 = vmul.f32 0.6931472, %v1769_v0  ;;  %v1414_v51 = vld [vmem:[#allocation2 + $0x50] sm:$0xff]  ;;  %vm3069_vm1 = vmmov %vm2979_vm0 }
 0x2c5   :  { %961 = vst.msk [vmem:[#allocation4 + $0x58] sm:$0xff] %vm3055_vm3, %v945_v1  ;;  %v2794_v7 = vpop.eup %1772  ;;  %v1527_v14 = vmul.f32 %v1765_v45, %v1489_v31  ;;  %v923_v22 = vpop.xlane.xlu0 %922  ;;  %1792 = vrcp.f32 %v1513_v10  ;;  %v1397_v29 = vmul.f32 0.6931472, %v1771_v50  ;;  %v1460_v21 = vmul.f32 %v1428_v49, %v2741_v35  ;;  %v1410_v50 = vld [vmem:[#allocation2 + $0x30] sm:$0xff]  ;;  %vm3070_vm3 = vmmov %vm2979_vm0 }
 0x2c6   :  { %v929_v52 = vpop.xlane.xlu1 %928  ;;  %v1775_v40 = vpop.eup %1774  ;;  %v1472_v8 = vsub.f32 %v1440_v20, %v1456_v61  ;;  %v944_v60 = vadd.f32 %v923_v22, %v880_v55  ;;  %1794 = vrcp.f32 %v1515_v30  ;;  %v1463_v37 = vmul.f32 %v1431_v53, %v2765_v24  ;;  %v884_v24 = vld [vmem:[#allocation4 + $0x70] sm:$0xff]  ;;  %v1443_v30 = vld [vmem:[#allocation4 + $0x38] sm:$0xff] }
 0x2c7   :  { %v947_v19 = vadd.f32 %v929_v52, %v883_v27  ;;  %v2798_v48 = vpop.eup %1776  ;;  %v1553_v42 = vmul.f32 -1.0, %v1527_v14  ;;  %v1387_v23 = vmul.f32 0.6931472, %v1775_v40  ;;  %v1430_v45 = vadd.f32 %v1414_v51, %v1393_v43  ;;  %v1419_v20 = vld [vmem:[#allocation2 + $0x78] sm:$0xff] }
 0x2c8   :  { %v1445_v2 = vld [vmem:[#allocation4 + $0x48] sm:$0xff]  ;;  %v2800_v6 = vpop.eup %1778  ;;  %v1488_v32 = vadd.f32 1e-05, %v1472_v8  ;;  %960 = vst.msk [vmem:[#allocation4 + $0x50] sm:$0xff] %vm3056_vm2, %v944_v60  ;;  %v1433_v35 = vadd.f32 %v1417_v47, %v1399_v9  ;;  %v1432_v26 = vadd.f32 %v1416_v28, %v1397_v29  ;;  %1796 = vrcp.f32 %v1514_v62  ;;  %vm3071_vm2 = vmmov %vm2979_vm0 }
 0x2c9   :  { %v1477_v4 = vsub.f32 %v1445_v2, %v1461_v58  ;;  %963 = vst.msk [vmem:[#allocation4 + $0x68] sm:$0xff] %vm3057_vm4, %v947_v19  ;;  %v1781_v57 = vpop.eup %1780  ;;  %v1427_v25 = vadd.f32 %v1411_v46, %v1387_v23  ;;  %v927_v17 = vpop.xlane.xlu0 %926  ;;  %v1462_v49 = vmul.f32 %v1430_v45, %v2744_v11 }
 0x2ca   :  { %1569 = vst.msk [vmem:[%s2874_s4 + $0x28] sm:$0xff] %vm3058_vm6, %v1553_v42  ;;  %v933_v38 = vpop.xlane.xlu1 %932  ;;  %v1783_v13 = vpop.eup %1782  ;;  %v1525_v5 = vmul.f32 %v2763_v33, %v1488_v32  ;;  %v946_v12 = vadd.f32 %v927_v17, %v882_v16  ;;  %v1442_v42 = vld [vmem:[#allocation4 + $0x30] sm:$0xff]  ;;  %v1465_v23 = vmul.f32 %v1433_v35, %v2778_v54  ;;  %v1464_v51 = vmul.f32 %v1432_v26, %v2750_v63 }
 0x2cb   :  { %v1493_v41 = vadd.f32 1e-05, %v1477_v4  ;;  %v949_v59 = vadd.f32 %v933_v38, %v885_v18  ;;  %v1785_v1 = vpop.eup %1784  ;;  %v1385_v55 = vmul.f32 0.6931472, %v1783_v13  ;;  %v1459_v0 = vmul.f32 %v1427_v25, %v2760_v15  ;;  %v1444_v10 = vld [vmem:[#allocation4 + $0x40] sm:$0xff] }
 0x2cc   :  { %v1447_v31 = vld [vmem:[#allocation4 + $0x58] sm:$0xff]  ;;  %v1787_v27 = vpop.eup %1786  ;;  %v1552_v36 = vmul.f32 -1.0, %v1525_v5  ;;  %v1403_v34 = vmul.f32 0.6931472, %v1785_v1  ;;  %v1476_v58 = vsub.f32 %v1444_v10, %v1460_v21  ;;  %962 = vst.msk [vmem:[#allocation4 + $0x60] sm:$0xff] %vm3059_vm13, %v946_v12 }
 0x2cd   :  { %v1535_v61 = vmul.f32 %v1781_v57, %v1493_v41  ;;  %965 = vst.msk [vmem:[#allocation4 + $0x78] sm:$0xff] %vm3060_vm14, %v949_v59  ;;  %v1789_v33 = vpop.eup %1788  ;;  %v1475_v43 = vsub.f32 %v1443_v30, %v1459_v0  ;;  %v1426_v15 = vadd.f32 %v1410_v50, %v1385_v55  ;;  %v1479_v14 = vsub.f32 %v1447_v31, %v1463_v37  ;;  %v931_v53 = vpop.xlane.xlu0 %930 }
 0x2ce   :  { %v1791_v22 = vpop.eup %1790  ;;  %1568 = vst.msk [vmem:[%s2874_s4 + $0x20] sm:$0xff] %vm3061_vm12, %v1552_v36  ;;  %v1492_v40 = vadd.f32 1e-05, %v1476_v58  ;;  %v1435_v8 = vadd.f32 %v1419_v20, %v1403_v34  ;;  %v948_v9 = vadd.f32 %v931_v53, %v884_v24 }
 0x2cf   :  { %v1557_v52 = vmul.f32 -1.0, %v1535_v61  ;;  %v1401_v60 = vmul.f32 0.6931472, %v1791_v22  ;;  %v1491_v19 = vadd.f32 1e-05, %v1475_v43  ;;  %v1458_v16 = vmul.f32 %v1426_v15, %v2729_v39  ;;  %v1446_v29 = vld [vmem:[#allocation4 + $0x50] sm:$0xff]  ;;  %v1793_v46 = vpop.eup %1792 }
 0x2d0   :  { %v1495_v18 = vadd.f32 1e-05, %v1479_v14  ;;  %v1533_v11 = vmul.f32 %v2794_v7, %v1492_v40  ;;  %v1449_v2 = vld [vmem:[#allocation4 + $0x68] sm:$0xff]  ;;  %964 = vst.msk [vmem:[#allocation4 + $0x70] sm:$0xff] %vm3063_vm15, %v948_v9  ;;  %v1418_v39 = vld [vmem:[#allocation2 + $0x70] sm:$0xff]  ;;  %v1478_v57 = vsub.f32 %v1446_v29, %v1462_v49  ;;  %v1795_v25 = vpop.eup %1794  ;;  %v1467_v45 = vmul.f32 %v1435_v8, %v2782_v3 }
 0x2d1   :  { %1573 = vst.msk [vmem:[%s2874_s4 + $0x48] sm:$0xff] %vm3062_vm7, %v1557_v52  ;;  %v1531_v32 = vmul.f32 %v1787_v27, %v1491_v19  ;;  %v1474_v62 = vsub.f32 %v1442_v42, %v1458_v16  ;;  %v1481_v37 = vsub.f32 %v1449_v2, %v1465_v23  ;;  %v1434_v7 = vadd.f32 %v1418_v39, %v1401_v60 }
 0x2d2   :  { %v1539_v4 = vmul.f32 %v1789_v33, %v1495_v18  ;;  %v1556_v21 = vmul.f32 -1.0, %v1533_v11  ;;  %v1494_v13 = vadd.f32 1e-05, %v1478_v57  ;;  %v1797_v24 = vpop.eup %1796 }
 0x2d3   :  { %v1555_v17 = vmul.f32 -1.0, %v1531_v32  ;;  %v1490_v38 = vadd.f32 1e-05, %v1474_v62  ;;  %v1497_v63 = vadd.f32 1e-05, %v1481_v37  ;;  %v1448_v47 = vld [vmem:[#allocation4 + $0x60] sm:$0xff]  ;;  %v1466_v1 = vmul.f32 %v1434_v7, %v2796_v56 }
 0x2d4   :  { %v1559_v54 = vmul.f32 -1.0, %v1539_v4  ;;  %1572 = vst.msk [vmem:[%s2874_s4 + $0x40] sm:$0xff] %vm3064_vm9, %v1556_v21  ;;  %v1451_v28 = vld [vmem:[#allocation4 + $0x78] sm:$0xff]  ;;  %v1537_v5 = vmul.f32 %v2798_v48, %v1494_v13  ;;  %v1480_v41 = vsub.f32 %v1448_v47, %v1464_v51 }
 0x2d5   :  { %1571 = vst.msk [vmem:[%s2874_s4 + $0x38] sm:$0xff] %vm3065_vm5, %v1555_v17  ;;  %v1529_v3 = vmul.f32 %v2776_v44, %v1490_v38  ;;  %v1483_v12 = vsub.f32 %v1451_v28, %v1467_v45  ;;  %v1543_v59 = vmul.f32 %v1793_v46, %v1497_v63 }
 0x2d6   :  { %1575 = vst.msk [vmem:[%s2874_s4 + $0x58] sm:$0xff] %vm2979_vm0, %v1559_v54  ;;  %v1558_v0 = vmul.f32 -1.0, %v1537_v5  ;;  %v1496_v10 = vadd.f32 1e-05, %v1480_v41 }
 0x2d7   :  { %v1554_v55 = vmul.f32 -1.0, %v1529_v3  ;;  %v1499_v31 = vadd.f32 1e-05, %v1483_v12  ;;  %v1561_v35 = vmul.f32 -1.0, %v1543_v59  ;;  %v1450_v26 = vld [vmem:[#allocation4 + $0x70] sm:$0xff] }
 0x2d8   :  { %1574 = vst.msk [vmem:[%s2874_s4 + $0x50] sm:$0xff] %vm3067_vm8, %v1558_v0  ;;  %v1541_v44 = vmul.f32 %v2800_v6, %v1496_v10  ;;  %v1482_v56 = vsub.f32 %v1450_v26, %v1466_v1 }
 0x2d9   :  { %1570 = vst.msk [vmem:[%s2874_s4 + $0x30] sm:$0xff] %vm3066_vm10, %v1554_v55  ;;  %v1547_v48 = vmul.f32 %v1795_v25, %v1499_v31 }
 0x2da   :  { %1577 = vst.msk [vmem:[%s2874_s4 + $0x68] sm:$0xff] %vm3068_vm11, %v1561_v35  ;;  %v1560_v27 = vmul.f32 -1.0, %v1541_v44  ;;  %v1498_v36 = vadd.f32 1e-05, %v1482_v56 }
 0x2db   :  { %v1563_v50 = vmul.f32 -1.0, %v1547_v48 }
 0x2dc   :  { %1576 = vst.msk [vmem:[%s2874_s4 + $0x60] sm:$0xff] %vm3069_vm1, %v1560_v27  ;;  %v1545_v6 = vmul.f32 %v1797_v24, %v1498_v36 }
 0x2dd   :  { %1579 = vst.msk [vmem:[%s2874_s4 + $0x78] sm:$0xff] %vm3070_vm3, %v1563_v50 }
 0x2de   :  { %v1562_v34 = vmul.f32 -1.0, %v1545_v6 }
 0x2e0   :  { %1578 = vst.msk [vmem:[%s2874_s4 + $0x70] sm:$0xff] %vm3071_vm2, %v1562_v34 }

</bundles_post_ra>
